<compile_context>
chip_gen: v7x
topology: tpu7x:2x2x1
jax: 0.10.0
libtpu: 0.0.40
codegen_flags: <defaults>
</compile_context>

<pallas_src>
import functools

import jax
import jax.numpy as jnp
from jax.experimental import pallas as pl
from jax.experimental.pallas import tpu as pltpu


# ---------------------------------------------------------------------------
# Fused kernel: one grid step = one batch element, all layers unrolled inside
# ---------------------------------------------------------------------------
def decoder_kernel(
    vm_ref,                       # (Sq, D)  f32   query / residual stream
    w_ref,                        # (Sk, D)  bf16  key/value stream
    bias_ref,                     # (1, Sk)  f32   key-padding bias (0 / -1e9)
    wq_ref, wk_ref, wv_ref,       # (L, D, D) bf16 (transposed; wq pre-scaled)
    bq_ref, bk_ref, bv_ref,       # (L, 1, D) f32  (bq pre-scaled)
    wo_ref,                       # (L, D, D) bf16 (transposed)
    bo_ref, gamma_ref, beta_ref,  # (L, 1, D) f32
    fcw_ref,                      # (D, P)   bf16 (transposed)
    fcb_ref,                      # (1, P)   f32
    out_ref,                      # (Sq, P)  f32
    *, num_layers: int, num_heads: int, head_dim: int, matmul_dtype,
):
    cd = matmul_dtype
    x = vm_ref[...]                        # (Sq, D) f32 residual stream
    y = w_ref[...]                         # (Sk, D) bf16 (reused by all layers)
    bias = bias_ref[...]                   # (1, Sk) f32

    for l in range(num_layers):            # static unroll over the 3 layers
        # Lane-dense full-D projections, f32 accumulation on the MXU.
        q = jnp.dot(x.astype(cd), wq_ref[l],
                    preferred_element_type=jnp.float32) + bq_ref[l]   # (Sq, D)
        k = jnp.dot(y, wk_ref[l],
                    preferred_element_type=jnp.float32) + bk_ref[l]   # (Sk, D)
        v = jnp.dot(y, wv_ref[l],
                    preferred_element_type=jnp.float32) + bv_ref[l]   # (Sk, D)
        qc, kc, vc = q.astype(cd), k.astype(cd), v.astype(cd)

        # Per-head attention (static unroll; per-head softmax requires the
        # hd-wide lane slices, but all other matmuls stay full-D).
        head_out = []
        for h in range(num_heads):
            sl = slice(h * head_dim, (h + 1) * head_dim)
            s = jax.lax.dot_general(                      # (Sq, Sk) f32
                qc[:, sl], kc[:, sl], (((1,), (1,)), ((), ())),
                preferred_element_type=jnp.float32)
            s = s + bias                                  # key-padding mask
            m = jnp.max(s, axis=-1, keepdims=True)
            p = jnp.exp(s - m)
            p = p / jnp.sum(p, axis=-1, keepdims=True)    # exact softmax (f32)
            head_out.append(
                jnp.dot(p.astype(cd), vc[:, sl],
                        preferred_element_type=jnp.float32))          # (Sq, hd)

        o_cat = jnp.concatenate(head_out, axis=-1)        # (Sq, D)
        attn = jnp.dot(o_cat.astype(cd), wo_ref[l],
                       preferred_element_type=jnp.float32) + bo_ref[l]

        # residual + LayerNorm (eps=1e-5, biased variance; matches nn.LayerNorm)
        z = x + attn
        mean = jnp.mean(z, axis=-1, keepdims=True)
        var = jnp.mean((z - mean) ** 2, axis=-1, keepdims=True)
        x = (z - mean) * jax.lax.rsqrt(var + 1e-5) * gamma_ref[l] + beta_ref[l]

    # Final fc fused into the same grid step (lane-dense P=256 output).
    out_ref[...] = (jnp.dot(x.astype(cd), fcw_ref[...],
                            preferred_element_type=jnp.float32) + fcb_ref[...])


# ---------------------------------------------------------------------------
# Wrapper: one-time layout plumbing + pallas_call
# ---------------------------------------------------------------------------
def _prep_params(params, num_heads, matmul_dtype):
    """Stack per-layer weights, pre-transpose, fold the attention scale into
    wq/bq, cast matmul operands to bf16 (all outside the kernel)."""
    blocks = params["blocks"]
    D = blocks[0]["wq"].shape[0]
    hd = D // num_heads
    scale = 1.0 / (hd ** 0.5)

    def stack(fn):
        return jnp.stack([fn(b) for b in blocks], axis=0)

    return {
        "wqT": stack(lambda b: b["wq"].T * scale).astype(matmul_dtype),  # (L,D,D)
        "bq":  stack(lambda b: b["bq"].reshape(1, D) * scale),           # (L,1,D)
        "wkT": stack(lambda b: b["wk"].T).astype(matmul_dtype),
        "bk":  stack(lambda b: b["bk"].reshape(1, D)),
        "wvT": stack(lambda b: b["wv"].T).astype(matmul_dtype),
        "bv":  stack(lambda b: b["bv"].reshape(1, D)),
        "woT": stack(lambda b: b["wo"].T).astype(matmul_dtype),
        "bo":  stack(lambda b: b["bo"].reshape(1, D)),
        "gamma": stack(lambda b: b["gamma"].reshape(1, D)),
        "beta":  stack(lambda b: b["beta"].reshape(1, D)),
        "fc_wT": params["fc_w"].T.astype(matmul_dtype),                  # (D, P)
        "fc_b":  params["fc_b"].reshape(1, -1),                          # (1, P)
    }


def img_cross_modality_decoder(vm, w, w_mask, params, num_heads,
                               matmul_dtype=jnp.bfloat16):
    """vm: [B, Sq, D] queries, w: [B, Sk, D] keys/values, w_mask: [B, Sk] bool
    (True = padding). Returns [B, Sq, patch_size**2]."""
    B, Sq, D = vm.shape
    Sk = w.shape[1]
    L = len(params["blocks"])
    hd = D // num_heads
    P = params["fc_w"].shape[0]

    pp = _prep_params(params, num_heads, matmul_dtype)

    vm_f32 = vm.astype(jnp.float32)                       # residual stream: f32
    w_cd = w.astype(matmul_dtype)                         # matmul-only operand
    # Per-batch additive key-padding bias, kept in f32 (magnitude matters).
    bias = jnp.where(w_mask, -1e9, 0.0).astype(jnp.float32).reshape(B, 1, Sk)

    kernel = functools.partial(
        decoder_kernel, num_layers=L, num_heads=num_heads,
        head_dim=hd, matmul_dtype=matmul_dtype)

    out = pl.pallas_call(
        kernel,
        out_shape=jax.ShapeDtypeStruct((B, Sq, P), jnp.float32),
        grid=(B,),
        in_specs=[
            pl.BlockSpec((pl.Squeezed(), Sq, D), lambda b: (b, 0, 0)),   # vm
            pl.BlockSpec((pl.Squeezed(), Sk, D), lambda b: (b, 0, 0)),   # w
            pl.BlockSpec((pl.Squeezed(), 1, Sk), lambda b: (b, 0, 0)),   # bias
            pl.BlockSpec((L, D, D), lambda b: (0, 0, 0)),                # wqT
            pl.BlockSpec((L, D, D), lambda b: (0, 0, 0)),                # wkT
            pl.BlockSpec((L, D, D), lambda b: (0, 0, 0)),                # wvT
            pl.BlockSpec((L, 1, D), lambda b: (0, 0, 0)),                # bq
            pl.BlockSpec((L, 1, D), lambda b: (0, 0, 0)),                # bk
            pl.BlockSpec((L, 1, D), lambda b: (0, 0, 0)),                # bv
            pl.BlockSpec((L, D, D), lambda b: (0, 0, 0)),                # woT
            pl.BlockSpec((L, 1, D), lambda b: (0, 0, 0)),                # bo
            pl.BlockSpec((L, 1, D), lambda b: (0, 0, 0)),                # gamma
            pl.BlockSpec((L, 1, D), lambda b: (0, 0, 0)),                # beta
            pl.BlockSpec((D, P), lambda b: (0, 0)),                      # fc_wT
            pl.BlockSpec((1, P), lambda b: (0, 0)),                      # fc_b
        ],
        out_specs=pl.BlockSpec((pl.Squeezed(), Sq, P), lambda b: (b, 0, 0)),
        compiler_params=pltpu.CompilerParams(
            dimension_semantics=("parallel",)),   # batches independent (v7x 2 TCs)
    )(vm_f32, w_cd, bias,
      pp["wqT"], pp["wkT"], pp["wvT"], pp["bq"], pp["bk"], pp["bv"],
      pp["woT"], pp["bo"], pp["gamma"], pp["beta"],
      pp["fc_wT"], pp["fc_b"])

    return out


# ---------------------------------------------------------------------------
# Pure-JAX f32 reference (matches the PyTorch module math)
# ---------------------------------------------------------------------------
def reference(vm, w, w_mask, params, num_heads):
    B, Sq, D = vm.shape
    Sk = w.shape[1]
    hd = D // num_heads
    bias = jnp.where(w_mask, -1e9, 0.0).astype(jnp.float32)[:, None, None, :]
    x = vm
    for p in params["blocks"]:
        q = x @ p["wq"].T + p["bq"][0]
        k = w @ p["wk"].T + p["bk"][0]
        v = w @ p["wv"].T + p["bv"][0]
        q = q.reshape(B, Sq, num_heads, hd).transpose(0, 2, 1, 3)
        k = k.reshape(B, Sk, num_heads, hd).transpose(0, 2, 1, 3)
        v = v.reshape(B, Sk, num_heads, hd).transpose(0, 2, 1, 3)
        s = jnp.einsum("bhqd,bhkd->bhqk", q, k) / (hd ** 0.5) + bias
        a = jax.nn.softmax(s, axis=-1)
        o = jnp.einsum("bhqk,bhkd->bhqd", a, v).transpose(0, 2, 1, 3).reshape(B, Sq, D)
        o = o @ p["wo"].T + p["bo"][0]
        z = x + o
        mean = jnp.mean(z, axis=-1, keepdims=True)
        var = jnp.mean((z - mean) ** 2, axis=-1, keepdims=True)
        x = (z - mean) * jax.lax.rsqrt(var + 1e-5) * p["gamma"][0] + p["beta"][0]
    return x @ params["fc_w"].T + params["fc_b"][0]


# ---------------------------------------------------------------------------
# Deterministic parameter construction (PyTorch layout: Linear is out x in)
# ---------------------------------------------------------------------------
def make_params(key, hidden_dim, num_layers, patch_size):
    blocks = []
    for i in range(num_layers):
        ks = jax.random.split(jax.random.fold_in(key, i), 8)
        blocks.append({
            "wq": jax.random.normal(ks[0], (hidden_dim, hidden_dim), jnp.float32) * 0.05,
            "wk": jax.random.normal(ks[1], (hidden_dim, hidden_dim), jnp.float32) * 0.05,
            "wv": jax.random.normal(ks[2], (hidden_dim, hidden_dim), jnp.float32) * 0.05,
            "bq": jax.random.normal(ks[4], (1, hidden_dim), jnp.float32) * 0.02,
            "bk": jax.random.normal(ks[5], (1, hidden_dim), jnp.float32) * 0.02,
            "bv": jax.random.normal(ks[6], (1, hidden_dim), jnp.float32) * 0.02,
            "wo": jax.random.normal(ks[3], (hidden_dim, hidden_dim), jnp.float32) * 0.05,
            "bo": jnp.full((1, hidden_dim), 0.01, jnp.float32),
            "gamma": 1.0 + jax.random.normal(ks[7], (1, hidden_dim), jnp.float32) * 0.1,
            "beta": jax.random.normal(jax.random.fold_in(ks[7], 1),
                                      (1, hidden_dim), jnp.float32) * 0.05,
        })
    kf = jax.random.fold_in(key, 100)
    out_dim = patch_size * patch_size * 1
    return {
        "blocks": blocks,
        "fc_w": jax.random.normal(kf, (out_dim, hidden_dim), jnp.float32) * 0.05,
        "fc_b": jnp.zeros((1, out_dim), jnp.float32),
    }


# ---------------------------------------------------------------------------
if __name__ == "__main__":
    B, V_SEQ, T_SEQ = 2, 8, 8
    HIDDEN, HEADS, LAYERS, PATCH = 32, 4, 3, 16

    key = jax.random.PRNGKey(0)
    k_vm, k_w, k_p = jax.random.split(key, 3)

    vm = jax.random.normal(k_vm, (B, V_SEQ, HIDDEN), jnp.float32)
    w = jax.random.normal(k_w, (B, T_SEQ, HIDDEN), jnp.float32)
    # key_padding_mask: True = padded token (last 2 tokens of batch element 1)
    w_mask = jnp.zeros((B, T_SEQ), jnp.bool_).at[1, -2:].set(True)

    params = make_params(k_p, HIDDEN, LAYERS, PATCH)

    out = img_cross_modality_decoder(vm, w, w_mask, params, HEADS)
    out = jax.block_until_ready(out)

    ref = reference(vm, w, w_mask, params, HEADS)
    assert out.shape == (B, V_SEQ, PATCH * PATCH), out.shape
    # bf16 matmul operands (f32 accumulation) -> relaxed tolerance
    assert jnp.allclose(out, ref, rtol=2e-2, atol=2e-2), (
        float(jnp.max(jnp.abs(out - ref))))

    print("KERNEL_OK")
</pallas_src>

<mosaic_0001>
module attributes {stable_mosaic.version = 11 : i64} {
  func.func @decoder_kernel(%arg0: i32, %arg1: memref<1x8x32xf32, #tpu.memory_space<vmem>>, %arg2: memref<1x8x32xbf16, #tpu.memory_space<vmem>>, %arg3: memref<1x1x8xf32, #tpu.memory_space<vmem>>, %arg4: memref<3x32x32xbf16, #tpu.memory_space<vmem>>, %arg5: memref<3x32x32xbf16, #tpu.memory_space<vmem>>, %arg6: memref<3x32x32xbf16, #tpu.memory_space<vmem>>, %arg7: memref<3x1x32xf32, #tpu.memory_space<vmem>>, %arg8: memref<3x1x32xf32, #tpu.memory_space<vmem>>, %arg9: memref<3x1x32xf32, #tpu.memory_space<vmem>>, %arg10: memref<3x32x32xbf16, #tpu.memory_space<vmem>>, %arg11: memref<3x1x32xf32, #tpu.memory_space<vmem>>, %arg12: memref<3x1x32xf32, #tpu.memory_space<vmem>>, %arg13: memref<3x1x32xf32, #tpu.memory_space<vmem>>, %arg14: memref<32x256xbf16, #tpu.memory_space<vmem>>, %arg15: memref<1x256xf32, #tpu.memory_space<vmem>>, %arg16: memref<1x8x256xf32, #tpu.memory_space<vmem>>) attributes {dimension_semantics = [#tpu.dimension_semantics<parallel>], iteration_bounds = array<i64: 2>, scalar_prefetch = 0 : i64, scratch_operands = 0 : i64, tpu.core_type = #tpu.core_type<tc>, window_params = [{transform_indices = @transform_0, window_bounds = array<i64: 1, 8, 32>}, {transform_indices = @transform_1, window_bounds = array<i64: 1, 8, 32>}, {transform_indices = @transform_2, window_bounds = array<i64: 1, 1, 8>}, {pipeline_mode = #tpu.pipeline_mode<synchronous>, transform_indices = @transform_3, window_bounds = array<i64: 3, 32, 32>}, {pipeline_mode = #tpu.pipeline_mode<synchronous>, transform_indices = @transform_4, window_bounds = array<i64: 3, 32, 32>}, {pipeline_mode = #tpu.pipeline_mode<synchronous>, transform_indices = @transform_5, window_bounds = array<i64: 3, 32, 32>}, {pipeline_mode = #tpu.pipeline_mode<synchronous>, transform_indices = @transform_6, window_bounds = array<i64: 3, 1, 32>}, {pipeline_mode = #tpu.pipeline_mode<synchronous>, transform_indices = @transform_7, window_bounds = array<i64: 3, 1, 32>}, {pipeline_mode = #tpu.pipeline_mode<synchronous>, transform_indices = @transform_8, window_bounds = array<i64: 3, 1, 32>}, {pipeline_mode = #tpu.pipeline_mode<synchronous>, transform_indices = @transform_9, window_bounds = array<i64: 3, 32, 32>}, {pipeline_mode = #tpu.pipeline_mode<synchronous>, transform_indices = @transform_10, window_bounds = array<i64: 3, 1, 32>}, {pipeline_mode = #tpu.pipeline_mode<synchronous>, transform_indices = @transform_11, window_bounds = array<i64: 3, 1, 32>}, {pipeline_mode = #tpu.pipeline_mode<synchronous>, transform_indices = @transform_12, window_bounds = array<i64: 3, 1, 32>}, {pipeline_mode = #tpu.pipeline_mode<synchronous>, transform_indices = @transform_13, window_bounds = array<i64: 32, 256>}, {pipeline_mode = #tpu.pipeline_mode<synchronous>, transform_indices = @transform_14, window_bounds = array<i64: 1, 256>}, {transform_indices = @transform_15, window_bounds = array<i64: 1, 8, 256>}]} {
    %c0 = arith.constant 0 : index
    %c0_0 = arith.constant 0 : index
    %c0_1 = arith.constant 0 : index
    %0 = vector.load %arg1[%c0, %c0_0, %c0_1] : memref<1x8x32xf32, #tpu.memory_space<vmem>>, vector<1x8x32xf32>
    %1 = vector.shape_cast %0 : vector<1x8x32xf32> to vector<8x32xf32>
    %c0_2 = arith.constant 0 : index
    %c0_3 = arith.constant 0 : index
    %c0_4 = arith.constant 0 : index
    %2 = vector.load %arg2[%c0_2, %c0_3, %c0_4] : memref<1x8x32xbf16, #tpu.memory_space<vmem>>, vector<1x8x32xbf16>
    %3 = vector.shape_cast %2 : vector<1x8x32xbf16> to vector<8x32xbf16>
    %c0_5 = arith.constant 0 : index
    %c0_6 = arith.constant 0 : index
    %c0_7 = arith.constant 0 : index
    %4 = vector.load %arg3[%c0_5, %c0_6, %c0_7] : memref<1x1x8xf32, #tpu.memory_space<vmem>>, vector<1x1x8xf32>
    %5 = vector.shape_cast %4 : vector<1x1x8xf32> to vector<1x8xf32>
    %6 = arith.truncf %1 : vector<8x32xf32> to vector<8x32xbf16>
    %c0_8 = arith.constant 0 : index
    %c0_9 = arith.constant 0 : index
    %c0_10 = arith.constant 0 : index
    %7 = vector.load %arg4[%c0_8, %c0_9, %c0_10] : memref<3x32x32xbf16, #tpu.memory_space<vmem>>, vector<1x32x32xbf16>
    %8 = vector.shape_cast %7 : vector<1x32x32xbf16> to vector<32x32xbf16>
    %cst = arith.constant dense<0.000000e+00> : vector<8x32xf32>
    %9 = tpu.matmul %6, %8, %cst {dimension_numbers = #tpu.dot_dimension_numbers<[1], [0], [0], [1], [0, 0, 1, 1], [], []>} : vector<8x32xbf16>, vector<32x32xbf16>, vector<8x32xf32> -> vector<8x32xf32>
    %c0_11 = arith.constant 0 : index
    %c0_12 = arith.constant 0 : index
    %c0_13 = arith.constant 0 : index
    %10 = vector.load %arg7[%c0_11, %c0_12, %c0_13] : memref<3x1x32xf32, #tpu.memory_space<vmem>>, vector<1x1x32xf32>
    %11 = vector.shape_cast %10 : vector<1x1x32xf32> to vector<1x32xf32>
    %12 = vector.broadcast %11 : vector<1x32xf32> to vector<8x32xf32>
    %13 = arith.addf %9, %12 : vector<8x32xf32>
    %c0_14 = arith.constant 0 : index
    %c0_15 = arith.constant 0 : index
    %c0_16 = arith.constant 0 : index
    %14 = vector.load %arg5[%c0_14, %c0_15, %c0_16] : memref<3x32x32xbf16, #tpu.memory_space<vmem>>, vector<1x32x32xbf16>
    %15 = vector.shape_cast %14 : vector<1x32x32xbf16> to vector<32x32xbf16>
    %cst_17 = arith.constant dense<0.000000e+00> : vector<8x32xf32>
    %16 = tpu.matmul %3, %15, %cst_17 {dimension_numbers = #tpu.dot_dimension_numbers<[1], [0], [0], [1], [0, 0, 1, 1], [], []>} : vector<8x32xbf16>, vector<32x32xbf16>, vector<8x32xf32> -> vector<8x32xf32>
    %c0_18 = arith.constant 0 : index
    %c0_19 = arith.constant 0 : index
    %c0_20 = arith.constant 0 : index
    %17 = vector.load %arg8[%c0_18, %c0_19, %c0_20] : memref<3x1x32xf32, #tpu.memory_space<vmem>>, vector<1x1x32xf32>
    %18 = vector.shape_cast %17 : vector<1x1x32xf32> to vector<1x32xf32>
    %19 = vector.broadcast %18 : vector<1x32xf32> to vector<8x32xf32>
    %20 = arith.addf %16, %19 : vector<8x32xf32>
    %c0_21 = arith.constant 0 : index
    %c0_22 = arith.constant 0 : index
    %c0_23 = arith.constant 0 : index
    %21 = vector.load %arg6[%c0_21, %c0_22, %c0_23] : memref<3x32x32xbf16, #tpu.memory_space<vmem>>, vector<1x32x32xbf16>
    %22 = vector.shape_cast %21 : vector<1x32x32xbf16> to vector<32x32xbf16>
    %cst_24 = arith.constant dense<0.000000e+00> : vector<8x32xf32>
    %23 = tpu.matmul %3, %22, %cst_24 {dimension_numbers = #tpu.dot_dimension_numbers<[1], [0], [0], [1], [0, 0, 1, 1], [], []>} : vector<8x32xbf16>, vector<32x32xbf16>, vector<8x32xf32> -> vector<8x32xf32>
    %c0_25 = arith.constant 0 : index
    %c0_26 = arith.constant 0 : index
    %c0_27 = arith.constant 0 : index
    %24 = vector.load %arg9[%c0_25, %c0_26, %c0_27] : memref<3x1x32xf32, #tpu.memory_space<vmem>>, vector<1x1x32xf32>
    %25 = vector.shape_cast %24 : vector<1x1x32xf32> to vector<1x32xf32>
    %26 = vector.broadcast %25 : vector<1x32xf32> to vector<8x32xf32>
    %27 = arith.addf %23, %26 : vector<8x32xf32>
    %28 = arith.truncf %13 : vector<8x32xf32> to vector<8x32xbf16>
    %29 = arith.truncf %20 : vector<8x32xf32> to vector<8x32xbf16>
    %30 = arith.truncf %27 : vector<8x32xf32> to vector<8x32xbf16>
    %31 = vector.extract_strided_slice %28 {offsets = [0, 0], sizes = [8, 8], strides = [1, 1]} : vector<8x32xbf16> to vector<8x8xbf16>
    %32 = vector.extract_strided_slice %29 {offsets = [0, 0], sizes = [8, 8], strides = [1, 1]} : vector<8x32xbf16> to vector<8x8xbf16>
    %cst_28 = arith.constant dense<0.000000e+00> : vector<8x8xf32>
    %33 = tpu.matmul %31, %32, %cst_28 {dimension_numbers = #tpu.dot_dimension_numbers<[1], [1], [0], [0], [0, 0, 1, 0], [], []>} : vector<8x8xbf16>, vector<8x8xbf16>, vector<8x8xf32> -> vector<8x8xf32>
    %34 = vector.broadcast %5 : vector<1x8xf32> to vector<8x8xf32>
    %35 = arith.addf %33, %34 : vector<8x8xf32>
    %cst_29 = arith.constant dense<0xFF800000> : vector<8xf32>
    %36 = vector.multi_reduction <maximumf>, %35, %cst_29 [1] : vector<8x8xf32> to vector<8xf32>
    %37 = vector.shape_cast %36 : vector<8xf32> to vector<8x1xf32>
    %38 = vector.broadcast %37 : vector<8x1xf32> to vector<8x8xf32>
    %39 = arith.subf %35, %38 : vector<8x8xf32>
    %40 = math.exp %39 : vector<8x8xf32>
    %cst_30 = arith.constant dense<0.000000e+00> : vector<8xf32>
    %41 = vector.multi_reduction <add>, %40, %cst_30 [1] : vector<8x8xf32> to vector<8xf32>
    %42 = vector.shape_cast %41 : vector<8xf32> to vector<8x1xf32>
    %43 = vector.broadcast %42 : vector<8x1xf32> to vector<8x8xf32>
    %44 = arith.divf %40, %43 : vector<8x8xf32>
    %45 = arith.truncf %44 : vector<8x8xf32> to vector<8x8xbf16>
    %46 = vector.extract_strided_slice %30 {offsets = [0, 0], sizes = [8, 8], strides = [1, 1]} : vector<8x32xbf16> to vector<8x8xbf16>
    %cst_31 = arith.constant dense<0.000000e+00> : vector<8x8xf32>
    %47 = tpu.matmul %45, %46, %cst_31 {dimension_numbers = #tpu.dot_dimension_numbers<[1], [0], [0], [1], [0, 0, 1, 1], [], []>} : vector<8x8xbf16>, vector<8x8xbf16>, vector<8x8xf32> -> vector<8x8xf32>
    %48 = vector.extract_strided_slice %28 {offsets = [0, 8], sizes = [8, 8], strides = [1, 1]} : vector<8x32xbf16> to vector<8x8xbf16>
    %49 = vector.extract_strided_slice %29 {offsets = [0, 8], sizes = [8, 8], strides = [1, 1]} : vector<8x32xbf16> to vector<8x8xbf16>
    %cst_32 = arith.constant dense<0.000000e+00> : vector<8x8xf32>
    %50 = tpu.matmul %48, %49, %cst_32 {dimension_numbers = #tpu.dot_dimension_numbers<[1], [1], [0], [0], [0, 0, 1, 0], [], []>} : vector<8x8xbf16>, vector<8x8xbf16>, vector<8x8xf32> -> vector<8x8xf32>
    %51 = vector.broadcast %5 : vector<1x8xf32> to vector<8x8xf32>
    %52 = arith.addf %50, %51 : vector<8x8xf32>
    %cst_33 = arith.constant dense<0xFF800000> : vector<8xf32>
    %53 = vector.multi_reduction <maximumf>, %52, %cst_33 [1] : vector<8x8xf32> to vector<8xf32>
    %54 = vector.shape_cast %53 : vector<8xf32> to vector<8x1xf32>
    %55 = vector.broadcast %54 : vector<8x1xf32> to vector<8x8xf32>
    %56 = arith.subf %52, %55 : vector<8x8xf32>
    %57 = math.exp %56 : vector<8x8xf32>
    %cst_34 = arith.constant dense<0.000000e+00> : vector<8xf32>
    %58 = vector.multi_reduction <add>, %57, %cst_34 [1] : vector<8x8xf32> to vector<8xf32>
    %59 = vector.shape_cast %58 : vector<8xf32> to vector<8x1xf32>
    %60 = vector.broadcast %59 : vector<8x1xf32> to vector<8x8xf32>
    %61 = arith.divf %57, %60 : vector<8x8xf32>
    %62 = arith.truncf %61 : vector<8x8xf32> to vector<8x8xbf16>
    %63 = vector.extract_strided_slice %30 {offsets = [0, 8], sizes = [8, 8], strides = [1, 1]} : vector<8x32xbf16> to vector<8x8xbf16>
    %cst_35 = arith.constant dense<0.000000e+00> : vector<8x8xf32>
    %64 = tpu.matmul %62, %63, %cst_35 {dimension_numbers = #tpu.dot_dimension_numbers<[1], [0], [0], [1], [0, 0, 1, 1], [], []>} : vector<8x8xbf16>, vector<8x8xbf16>, vector<8x8xf32> -> vector<8x8xf32>
    %65 = vector.extract_strided_slice %28 {offsets = [0, 16], sizes = [8, 8], strides = [1, 1]} : vector<8x32xbf16> to vector<8x8xbf16>
    %66 = vector.extract_strided_slice %29 {offsets = [0, 16], sizes = [8, 8], strides = [1, 1]} : vector<8x32xbf16> to vector<8x8xbf16>
    %cst_36 = arith.constant dense<0.000000e+00> : vector<8x8xf32>
    %67 = tpu.matmul %65, %66, %cst_36 {dimension_numbers = #tpu.dot_dimension_numbers<[1], [1], [0], [0], [0, 0, 1, 0], [], []>} : vector<8x8xbf16>, vector<8x8xbf16>, vector<8x8xf32> -> vector<8x8xf32>
    %68 = vector.broadcast %5 : vector<1x8xf32> to vector<8x8xf32>
    %69 = arith.addf %67, %68 : vector<8x8xf32>
    %cst_37 = arith.constant dense<0xFF800000> : vector<8xf32>
    %70 = vector.multi_reduction <maximumf>, %69, %cst_37 [1] : vector<8x8xf32> to vector<8xf32>
    %71 = vector.shape_cast %70 : vector<8xf32> to vector<8x1xf32>
    %72 = vector.broadcast %71 : vector<8x1xf32> to vector<8x8xf32>
    %73 = arith.subf %69, %72 : vector<8x8xf32>
    %74 = math.exp %73 : vector<8x8xf32>
    %cst_38 = arith.constant dense<0.000000e+00> : vector<8xf32>
    %75 = vector.multi_reduction <add>, %74, %cst_38 [1] : vector<8x8xf32> to vector<8xf32>
    %76 = vector.shape_cast %75 : vector<8xf32> to vector<8x1xf32>
    %77 = vector.broadcast %76 : vector<8x1xf32> to vector<8x8xf32>
    %78 = arith.divf %74, %77 : vector<8x8xf32>
    %79 = arith.truncf %78 : vector<8x8xf32> to vector<8x8xbf16>
    %80 = vector.extract_strided_slice %30 {offsets = [0, 16], sizes = [8, 8], strides = [1, 1]} : vector<8x32xbf16> to vector<8x8xbf16>
    %cst_39 = arith.constant dense<0.000000e+00> : vector<8x8xf32>
    %81 = tpu.matmul %79, %80, %cst_39 {dimension_numbers = #tpu.dot_dimension_numbers<[1], [0], [0], [1], [0, 0, 1, 1], [], []>} : vector<8x8xbf16>, vector<8x8xbf16>, vector<8x8xf32> -> vector<8x8xf32>
    %82 = vector.extract_strided_slice %28 {offsets = [0, 24], sizes = [8, 8], strides = [1, 1]} : vector<8x32xbf16> to vector<8x8xbf16>
    %83 = vector.extract_strided_slice %29 {offsets = [0, 24], sizes = [8, 8], strides = [1, 1]} : vector<8x32xbf16> to vector<8x8xbf16>
    %cst_40 = arith.constant dense<0.000000e+00> : vector<8x8xf32>
    %84 = tpu.matmul %82, %83, %cst_40 {dimension_numbers = #tpu.dot_dimension_numbers<[1], [1], [0], [0], [0, 0, 1, 0], [], []>} : vector<8x8xbf16>, vector<8x8xbf16>, vector<8x8xf32> -> vector<8x8xf32>
    %85 = vector.broadcast %5 : vector<1x8xf32> to vector<8x8xf32>
    %86 = arith.addf %84, %85 : vector<8x8xf32>
    %cst_41 = arith.constant dense<0xFF800000> : vector<8xf32>
    %87 = vector.multi_reduction <maximumf>, %86, %cst_41 [1] : vector<8x8xf32> to vector<8xf32>
    %88 = vector.shape_cast %87 : vector<8xf32> to vector<8x1xf32>
    %89 = vector.broadcast %88 : vector<8x1xf32> to vector<8x8xf32>
    %90 = arith.subf %86, %89 : vector<8x8xf32>
    %91 = math.exp %90 : vector<8x8xf32>
    %cst_42 = arith.constant dense<0.000000e+00> : vector<8xf32>
    %92 = vector.multi_reduction <add>, %91, %cst_42 [1] : vector<8x8xf32> to vector<8xf32>
    %93 = vector.shape_cast %92 : vector<8xf32> to vector<8x1xf32>
    %94 = vector.broadcast %93 : vector<8x1xf32> to vector<8x8xf32>
    %95 = arith.divf %91, %94 : vector<8x8xf32>
    %96 = arith.truncf %95 : vector<8x8xf32> to vector<8x8xbf16>
    %97 = vector.extract_strided_slice %30 {offsets = [0, 24], sizes = [8, 8], strides = [1, 1]} : vector<8x32xbf16> to vector<8x8xbf16>
    %cst_43 = arith.constant dense<0.000000e+00> : vector<8x8xf32>
    %98 = tpu.matmul %96, %97, %cst_43 {dimension_numbers = #tpu.dot_dimension_numbers<[1], [0], [0], [1], [0, 0, 1, 1], [], []>} : vector<8x8xbf16>, vector<8x8xbf16>, vector<8x8xf32> -> vector<8x8xf32>
    %99 = tpu.concatenate %47, %64, %81, %98 in 1 : vector<8x8xf32>, vector<8x8xf32>, vector<8x8xf32>, vector<8x8xf32> -> vector<8x32xf32>
    %100 = arith.truncf %99 : vector<8x32xf32> to vector<8x32xbf16>
    %c0_44 = arith.constant 0 : index
    %c0_45 = arith.constant 0 : index
    %c0_46 = arith.constant 0 : index
    %101 = vector.load %arg10[%c0_44, %c0_45, %c0_46] : memref<3x32x32xbf16, #tpu.memory_space<vmem>>, vector<1x32x32xbf16>
    %102 = vector.shape_cast %101 : vector<1x32x32xbf16> to vector<32x32xbf16>
    %cst_47 = arith.constant dense<0.000000e+00> : vector<8x32xf32>
    %103 = tpu.matmul %100, %102, %cst_47 {dimension_numbers = #tpu.dot_dimension_numbers<[1], [0], [0], [1], [0, 0, 1, 1], [], []>} : vector<8x32xbf16>, vector<32x32xbf16>, vector<8x32xf32> -> vector<8x32xf32>
    %c0_48 = arith.constant 0 : index
    %c0_49 = arith.constant 0 : index
    %c0_50 = arith.constant 0 : index
    %104 = vector.load %arg11[%c0_48, %c0_49, %c0_50] : memref<3x1x32xf32, #tpu.memory_space<vmem>>, vector<1x1x32xf32>
    %105 = vector.shape_cast %104 : vector<1x1x32xf32> to vector<1x32xf32>
    %106 = vector.broadcast %105 : vector<1x32xf32> to vector<8x32xf32>
    %107 = arith.addf %103, %106 : vector<8x32xf32>
    %108 = arith.addf %1, %107 : vector<8x32xf32>
    %cst_51 = arith.constant dense<0.000000e+00> : vector<8xf32>
    %109 = vector.multi_reduction <add>, %108, %cst_51 [1] : vector<8x32xf32> to vector<8xf32>
    %110 = vector.shape_cast %109 : vector<8xf32> to vector<8x1xf32>
    %cst_52 = arith.constant 3.200000e+01 : f32
    %111 = vector.broadcast %cst_52 : f32 to vector<8x1xf32>
    %112 = arith.divf %110, %111 : vector<8x1xf32>
    %113 = vector.broadcast %112 : vector<8x1xf32> to vector<8x32xf32>
    %114 = arith.subf %108, %113 : vector<8x32xf32>
    %115 = arith.mulf %114, %114 : vector<8x32xf32>
    %cst_53 = arith.constant dense<0.000000e+00> : vector<8xf32>
    %116 = vector.multi_reduction <add>, %115, %cst_53 [1] : vector<8x32xf32> to vector<8xf32>
    %117 = vector.shape_cast %116 : vector<8xf32> to vector<8x1xf32>
    %cst_54 = arith.constant 3.200000e+01 : f32
    %118 = vector.broadcast %cst_54 : f32 to vector<8x1xf32>
    %119 = arith.divf %117, %118 : vector<8x1xf32>
    %120 = vector.broadcast %112 : vector<8x1xf32> to vector<8x32xf32>
    %121 = arith.subf %108, %120 : vector<8x32xf32>
    %cst_55 = arith.constant 9.99999974E-6 : f32
    %122 = vector.broadcast %cst_55 : f32 to vector<8x1xf32>
    %123 = arith.addf %119, %122 : vector<8x1xf32>
    %124 = math.rsqrt %123 : vector<8x1xf32>
    %125 = vector.broadcast %124 : vector<8x1xf32> to vector<8x32xf32>
    %126 = arith.mulf %121, %125 : vector<8x32xf32>
    %c0_56 = arith.constant 0 : index
    %c0_57 = arith.constant 0 : index
    %c0_58 = arith.constant 0 : index
    %127 = vector.load %arg12[%c0_56, %c0_57, %c0_58] : memref<3x1x32xf32, #tpu.memory_space<vmem>>, vector<1x1x32xf32>
    %128 = vector.shape_cast %127 : vector<1x1x32xf32> to vector<1x32xf32>
    %129 = vector.broadcast %128 : vector<1x32xf32> to vector<8x32xf32>
    %130 = arith.mulf %126, %129 : vector<8x32xf32>
    %c0_59 = arith.constant 0 : index
    %c0_60 = arith.constant 0 : index
    %c0_61 = arith.constant 0 : index
    %131 = vector.load %arg13[%c0_59, %c0_60, %c0_61] : memref<3x1x32xf32, #tpu.memory_space<vmem>>, vector<1x1x32xf32>
    %132 = vector.shape_cast %131 : vector<1x1x32xf32> to vector<1x32xf32>
    %133 = vector.broadcast %132 : vector<1x32xf32> to vector<8x32xf32>
    %134 = arith.addf %130, %133 : vector<8x32xf32>
    %135 = arith.truncf %134 : vector<8x32xf32> to vector<8x32xbf16>
    %c1 = arith.constant 1 : index
    %c0_62 = arith.constant 0 : index
    %c0_63 = arith.constant 0 : index
    %136 = vector.load %arg4[%c1, %c0_62, %c0_63] : memref<3x32x32xbf16, #tpu.memory_space<vmem>>, vector<1x32x32xbf16>
    %137 = vector.shape_cast %136 : vector<1x32x32xbf16> to vector<32x32xbf16>
    %cst_64 = arith.constant dense<0.000000e+00> : vector<8x32xf32>
    %138 = tpu.matmul %135, %137, %cst_64 {dimension_numbers = #tpu.dot_dimension_numbers<[1], [0], [0], [1], [0, 0, 1, 1], [], []>} : vector<8x32xbf16>, vector<32x32xbf16>, vector<8x32xf32> -> vector<8x32xf32>
    %c1_65 = arith.constant 1 : index
    %c0_66 = arith.constant 0 : index
    %c0_67 = arith.constant 0 : index
    %139 = vector.load %arg7[%c1_65, %c0_66, %c0_67] : memref<3x1x32xf32, #tpu.memory_space<vmem>>, vector<1x1x32xf32>
    %140 = vector.shape_cast %139 : vector<1x1x32xf32> to vector<1x32xf32>
    %141 = vector.broadcast %140 : vector<1x32xf32> to vector<8x32xf32>
    %142 = arith.addf %138, %141 : vector<8x32xf32>
    %c1_68 = arith.constant 1 : index
    %c0_69 = arith.constant 0 : index
    %c0_70 = arith.constant 0 : index
    %143 = vector.load %arg5[%c1_68, %c0_69, %c0_70] : memref<3x32x32xbf16, #tpu.memory_space<vmem>>, vector<1x32x32xbf16>
    %144 = vector.shape_cast %143 : vector<1x32x32xbf16> to vector<32x32xbf16>
    %cst_71 = arith.constant dense<0.000000e+00> : vector<8x32xf32>
    %145 = tpu.matmul %3, %144, %cst_71 {dimension_numbers = #tpu.dot_dimension_numbers<[1], [0], [0], [1], [0, 0, 1, 1], [], []>} : vector<8x32xbf16>, vector<32x32xbf16>, vector<8x32xf32> -> vector<8x32xf32>
    %c1_72 = arith.constant 1 : index
    %c0_73 = arith.constant 0 : index
    %c0_74 = arith.constant 0 : index
    %146 = vector.load %arg8[%c1_72, %c0_73, %c0_74] : memref<3x1x32xf32, #tpu.memory_space<vmem>>, vector<1x1x32xf32>
    %147 = vector.shape_cast %146 : vector<1x1x32xf32> to vector<1x32xf32>
    %148 = vector.broadcast %147 : vector<1x32xf32> to vector<8x32xf32>
    %149 = arith.addf %145, %148 : vector<8x32xf32>
    %c1_75 = arith.constant 1 : index
    %c0_76 = arith.constant 0 : index
    %c0_77 = arith.constant 0 : index
    %150 = vector.load %arg6[%c1_75, %c0_76, %c0_77] : memref<3x32x32xbf16, #tpu.memory_space<vmem>>, vector<1x32x32xbf16>
    %151 = vector.shape_cast %150 : vector<1x32x32xbf16> to vector<32x32xbf16>
    %cst_78 = arith.constant dense<0.000000e+00> : vector<8x32xf32>
    %152 = tpu.matmul %3, %151, %cst_78 {dimension_numbers = #tpu.dot_dimension_numbers<[1], [0], [0], [1], [0, 0, 1, 1], [], []>} : vector<8x32xbf16>, vector<32x32xbf16>, vector<8x32xf32> -> vector<8x32xf32>
    %c1_79 = arith.constant 1 : index
    %c0_80 = arith.constant 0 : index
    %c0_81 = arith.constant 0 : index
    %153 = vector.load %arg9[%c1_79, %c0_80, %c0_81] : memref<3x1x32xf32, #tpu.memory_space<vmem>>, vector<1x1x32xf32>
    %154 = vector.shape_cast %153 : vector<1x1x32xf32> to vector<1x32xf32>
    %155 = vector.broadcast %154 : vector<1x32xf32> to vector<8x32xf32>
    %156 = arith.addf %152, %155 : vector<8x32xf32>
    %157 = arith.truncf %142 : vector<8x32xf32> to vector<8x32xbf16>
    %158 = arith.truncf %149 : vector<8x32xf32> to vector<8x32xbf16>
    %159 = arith.truncf %156 : vector<8x32xf32> to vector<8x32xbf16>
    %160 = vector.extract_strided_slice %157 {offsets = [0, 0], sizes = [8, 8], strides = [1, 1]} : vector<8x32xbf16> to vector<8x8xbf16>
    %161 = vector.extract_strided_slice %158 {offsets = [0, 0], sizes = [8, 8], strides = [1, 1]} : vector<8x32xbf16> to vector<8x8xbf16>
    %cst_82 = arith.constant dense<0.000000e+00> : vector<8x8xf32>
    %162 = tpu.matmul %160, %161, %cst_82 {dimension_numbers = #tpu.dot_dimension_numbers<[1], [1], [0], [0], [0, 0, 1, 0], [], []>} : vector<8x8xbf16>, vector<8x8xbf16>, vector<8x8xf32> -> vector<8x8xf32>
    %163 = vector.broadcast %5 : vector<1x8xf32> to vector<8x8xf32>
    %164 = arith.addf %162, %163 : vector<8x8xf32>
    %cst_83 = arith.constant dense<0xFF800000> : vector<8xf32>
    %165 = vector.multi_reduction <maximumf>, %164, %cst_83 [1] : vector<8x8xf32> to vector<8xf32>
    %166 = vector.shape_cast %165 : vector<8xf32> to vector<8x1xf32>
    %167 = vector.broadcast %166 : vector<8x1xf32> to vector<8x8xf32>
    %168 = arith.subf %164, %167 : vector<8x8xf32>
    %169 = math.exp %168 : vector<8x8xf32>
    %cst_84 = arith.constant dense<0.000000e+00> : vector<8xf32>
    %170 = vector.multi_reduction <add>, %169, %cst_84 [1] : vector<8x8xf32> to vector<8xf32>
    %171 = vector.shape_cast %170 : vector<8xf32> to vector<8x1xf32>
    %172 = vector.broadcast %171 : vector<8x1xf32> to vector<8x8xf32>
    %173 = arith.divf %169, %172 : vector<8x8xf32>
    %174 = arith.truncf %173 : vector<8x8xf32> to vector<8x8xbf16>
    %175 = vector.extract_strided_slice %159 {offsets = [0, 0], sizes = [8, 8], strides = [1, 1]} : vector<8x32xbf16> to vector<8x8xbf16>
    %cst_85 = arith.constant dense<0.000000e+00> : vector<8x8xf32>
    %176 = tpu.matmul %174, %175, %cst_85 {dimension_numbers = #tpu.dot_dimension_numbers<[1], [0], [0], [1], [0, 0, 1, 1], [], []>} : vector<8x8xbf16>, vector<8x8xbf16>, vector<8x8xf32> -> vector<8x8xf32>
    %177 = vector.extract_strided_slice %157 {offsets = [0, 8], sizes = [8, 8], strides = [1, 1]} : vector<8x32xbf16> to vector<8x8xbf16>
    %178 = vector.extract_strided_slice %158 {offsets = [0, 8], sizes = [8, 8], strides = [1, 1]} : vector<8x32xbf16> to vector<8x8xbf16>
    %cst_86 = arith.constant dense<0.000000e+00> : vector<8x8xf32>
    %179 = tpu.matmul %177, %178, %cst_86 {dimension_numbers = #tpu.dot_dimension_numbers<[1], [1], [0], [0], [0, 0, 1, 0], [], []>} : vector<8x8xbf16>, vector<8x8xbf16>, vector<8x8xf32> -> vector<8x8xf32>
    %180 = vector.broadcast %5 : vector<1x8xf32> to vector<8x8xf32>
    %181 = arith.addf %179, %180 : vector<8x8xf32>
    %cst_87 = arith.constant dense<0xFF800000> : vector<8xf32>
    %182 = vector.multi_reduction <maximumf>, %181, %cst_87 [1] : vector<8x8xf32> to vector<8xf32>
    %183 = vector.shape_cast %182 : vector<8xf32> to vector<8x1xf32>
    %184 = vector.broadcast %183 : vector<8x1xf32> to vector<8x8xf32>
    %185 = arith.subf %181, %184 : vector<8x8xf32>
    %186 = math.exp %185 : vector<8x8xf32>
    %cst_88 = arith.constant dense<0.000000e+00> : vector<8xf32>
    %187 = vector.multi_reduction <add>, %186, %cst_88 [1] : vector<8x8xf32> to vector<8xf32>
    %188 = vector.shape_cast %187 : vector<8xf32> to vector<8x1xf32>
    %189 = vector.broadcast %188 : vector<8x1xf32> to vector<8x8xf32>
    %190 = arith.divf %186, %189 : vector<8x8xf32>
    %191 = arith.truncf %190 : vector<8x8xf32> to vector<8x8xbf16>
    %192 = vector.extract_strided_slice %159 {offsets = [0, 8], sizes = [8, 8], strides = [1, 1]} : vector<8x32xbf16> to vector<8x8xbf16>
    %cst_89 = arith.constant dense<0.000000e+00> : vector<8x8xf32>
    %193 = tpu.matmul %191, %192, %cst_89 {dimension_numbers = #tpu.dot_dimension_numbers<[1], [0], [0], [1], [0, 0, 1, 1], [], []>} : vector<8x8xbf16>, vector<8x8xbf16>, vector<8x8xf32> -> vector<8x8xf32>
    %194 = vector.extract_strided_slice %157 {offsets = [0, 16], sizes = [8, 8], strides = [1, 1]} : vector<8x32xbf16> to vector<8x8xbf16>
    %195 = vector.extract_strided_slice %158 {offsets = [0, 16], sizes = [8, 8], strides = [1, 1]} : vector<8x32xbf16> to vector<8x8xbf16>
    %cst_90 = arith.constant dense<0.000000e+00> : vector<8x8xf32>
    %196 = tpu.matmul %194, %195, %cst_90 {dimension_numbers = #tpu.dot_dimension_numbers<[1], [1], [0], [0], [0, 0, 1, 0], [], []>} : vector<8x8xbf16>, vector<8x8xbf16>, vector<8x8xf32> -> vector<8x8xf32>
    %197 = vector.broadcast %5 : vector<1x8xf32> to vector<8x8xf32>
    %198 = arith.addf %196, %197 : vector<8x8xf32>
    %cst_91 = arith.constant dense<0xFF800000> : vector<8xf32>
    %199 = vector.multi_reduction <maximumf>, %198, %cst_91 [1] : vector<8x8xf32> to vector<8xf32>
    %200 = vector.shape_cast %199 : vector<8xf32> to vector<8x1xf32>
    %201 = vector.broadcast %200 : vector<8x1xf32> to vector<8x8xf32>
    %202 = arith.subf %198, %201 : vector<8x8xf32>
    %203 = math.exp %202 : vector<8x8xf32>
    %cst_92 = arith.constant dense<0.000000e+00> : vector<8xf32>
    %204 = vector.multi_reduction <add>, %203, %cst_92 [1] : vector<8x8xf32> to vector<8xf32>
    %205 = vector.shape_cast %204 : vector<8xf32> to vector<8x1xf32>
    %206 = vector.broadcast %205 : vector<8x1xf32> to vector<8x8xf32>
    %207 = arith.divf %203, %206 : vector<8x8xf32>
    %208 = arith.truncf %207 : vector<8x8xf32> to vector<8x8xbf16>
    %209 = vector.extract_strided_slice %159 {offsets = [0, 16], sizes = [8, 8], strides = [1, 1]} : vector<8x32xbf16> to vector<8x8xbf16>
    %cst_93 = arith.constant dense<0.000000e+00> : vector<8x8xf32>
    %210 = tpu.matmul %208, %209, %cst_93 {dimension_numbers = #tpu.dot_dimension_numbers<[1], [0], [0], [1], [0, 0, 1, 1], [], []>} : vector<8x8xbf16>, vector<8x8xbf16>, vector<8x8xf32> -> vector<8x8xf32>
    %211 = vector.extract_strided_slice %157 {offsets = [0, 24], sizes = [8, 8], strides = [1, 1]} : vector<8x32xbf16> to vector<8x8xbf16>
    %212 = vector.extract_strided_slice %158 {offsets = [0, 24], sizes = [8, 8], strides = [1, 1]} : vector<8x32xbf16> to vector<8x8xbf16>
    %cst_94 = arith.constant dense<0.000000e+00> : vector<8x8xf32>
    %213 = tpu.matmul %211, %212, %cst_94 {dimension_numbers = #tpu.dot_dimension_numbers<[1], [1], [0], [0], [0, 0, 1, 0], [], []>} : vector<8x8xbf16>, vector<8x8xbf16>, vector<8x8xf32> -> vector<8x8xf32>
    %214 = vector.broadcast %5 : vector<1x8xf32> to vector<8x8xf32>
    %215 = arith.addf %213, %214 : vector<8x8xf32>
    %cst_95 = arith.constant dense<0xFF800000> : vector<8xf32>
    %216 = vector.multi_reduction <maximumf>, %215, %cst_95 [1] : vector<8x8xf32> to vector<8xf32>
    %217 = vector.shape_cast %216 : vector<8xf32> to vector<8x1xf32>
    %218 = vector.broadcast %217 : vector<8x1xf32> to vector<8x8xf32>
    %219 = arith.subf %215, %218 : vector<8x8xf32>
    %220 = math.exp %219 : vector<8x8xf32>
    %cst_96 = arith.constant dense<0.000000e+00> : vector<8xf32>
    %221 = vector.multi_reduction <add>, %220, %cst_96 [1] : vector<8x8xf32> to vector<8xf32>
    %222 = vector.shape_cast %221 : vector<8xf32> to vector<8x1xf32>
    %223 = vector.broadcast %222 : vector<8x1xf32> to vector<8x8xf32>
    %224 = arith.divf %220, %223 : vector<8x8xf32>
    %225 = arith.truncf %224 : vector<8x8xf32> to vector<8x8xbf16>
    %226 = vector.extract_strided_slice %159 {offsets = [0, 24], sizes = [8, 8], strides = [1, 1]} : vector<8x32xbf16> to vector<8x8xbf16>
    %cst_97 = arith.constant dense<0.000000e+00> : vector<8x8xf32>
    %227 = tpu.matmul %225, %226, %cst_97 {dimension_numbers = #tpu.dot_dimension_numbers<[1], [0], [0], [1], [0, 0, 1, 1], [], []>} : vector<8x8xbf16>, vector<8x8xbf16>, vector<8x8xf32> -> vector<8x8xf32>
    %228 = tpu.concatenate %176, %193, %210, %227 in 1 : vector<8x8xf32>, vector<8x8xf32>, vector<8x8xf32>, vector<8x8xf32> -> vector<8x32xf32>
    %229 = arith.truncf %228 : vector<8x32xf32> to vector<8x32xbf16>
    %c1_98 = arith.constant 1 : index
    %c0_99 = arith.constant 0 : index
    %c0_100 = arith.constant 0 : index
    %230 = vector.load %arg10[%c1_98, %c0_99, %c0_100] : memref<3x32x32xbf16, #tpu.memory_space<vmem>>, vector<1x32x32xbf16>
    %231 = vector.shape_cast %230 : vector<1x32x32xbf16> to vector<32x32xbf16>
    %cst_101 = arith.constant dense<0.000000e+00> : vector<8x32xf32>
    %232 = tpu.matmul %229, %231, %cst_101 {dimension_numbers = #tpu.dot_dimension_numbers<[1], [0], [0], [1], [0, 0, 1, 1], [], []>} : vector<8x32xbf16>, vector<32x32xbf16>, vector<8x32xf32> -> vector<8x32xf32>
    %c1_102 = arith.constant 1 : index
    %c0_103 = arith.constant 0 : index
    %c0_104 = arith.constant 0 : index
    %233 = vector.load %arg11[%c1_102, %c0_103, %c0_104] : memref<3x1x32xf32, #tpu.memory_space<vmem>>, vector<1x1x32xf32>
    %234 = vector.shape_cast %233 : vector<1x1x32xf32> to vector<1x32xf32>
    %235 = vector.broadcast %234 : vector<1x32xf32> to vector<8x32xf32>
    %236 = arith.addf %232, %235 : vector<8x32xf32>
    %237 = arith.addf %134, %236 : vector<8x32xf32>
    %cst_105 = arith.constant dense<0.000000e+00> : vector<8xf32>
    %238 = vector.multi_reduction <add>, %237, %cst_105 [1] : vector<8x32xf32> to vector<8xf32>
    %239 = vector.shape_cast %238 : vector<8xf32> to vector<8x1xf32>
    %cst_106 = arith.constant 3.200000e+01 : f32
    %240 = vector.broadcast %cst_106 : f32 to vector<8x1xf32>
    %241 = arith.divf %239, %240 : vector<8x1xf32>
    %242 = vector.broadcast %241 : vector<8x1xf32> to vector<8x32xf32>
    %243 = arith.subf %237, %242 : vector<8x32xf32>
    %244 = arith.mulf %243, %243 : vector<8x32xf32>
    %cst_107 = arith.constant dense<0.000000e+00> : vector<8xf32>
    %245 = vector.multi_reduction <add>, %244, %cst_107 [1] : vector<8x32xf32> to vector<8xf32>
    %246 = vector.shape_cast %245 : vector<8xf32> to vector<8x1xf32>
    %cst_108 = arith.constant 3.200000e+01 : f32
    %247 = vector.broadcast %cst_108 : f32 to vector<8x1xf32>
    %248 = arith.divf %246, %247 : vector<8x1xf32>
    %249 = vector.broadcast %241 : vector<8x1xf32> to vector<8x32xf32>
    %250 = arith.subf %237, %249 : vector<8x32xf32>
    %cst_109 = arith.constant 9.99999974E-6 : f32
    %251 = vector.broadcast %cst_109 : f32 to vector<8x1xf32>
    %252 = arith.addf %248, %251 : vector<8x1xf32>
    %253 = math.rsqrt %252 : vector<8x1xf32>
    %254 = vector.broadcast %253 : vector<8x1xf32> to vector<8x32xf32>
    %255 = arith.mulf %250, %254 : vector<8x32xf32>
    %c1_110 = arith.constant 1 : index
    %c0_111 = arith.constant 0 : index
    %c0_112 = arith.constant 0 : index
    %256 = vector.load %arg12[%c1_110, %c0_111, %c0_112] : memref<3x1x32xf32, #tpu.memory_space<vmem>>, vector<1x1x32xf32>
    %257 = vector.shape_cast %256 : vector<1x1x32xf32> to vector<1x32xf32>
    %258 = vector.broadcast %257 : vector<1x32xf32> to vector<8x32xf32>
    %259 = arith.mulf %255, %258 : vector<8x32xf32>
    %c1_113 = arith.constant 1 : index
    %c0_114 = arith.constant 0 : index
    %c0_115 = arith.constant 0 : index
    %260 = vector.load %arg13[%c1_113, %c0_114, %c0_115] : memref<3x1x32xf32, #tpu.memory_space<vmem>>, vector<1x1x32xf32>
    %261 = vector.shape_cast %260 : vector<1x1x32xf32> to vector<1x32xf32>
    %262 = vector.broadcast %261 : vector<1x32xf32> to vector<8x32xf32>
    %263 = arith.addf %259, %262 : vector<8x32xf32>
    %264 = arith.truncf %263 : vector<8x32xf32> to vector<8x32xbf16>
    %c2 = arith.constant 2 : index
    %c0_116 = arith.constant 0 : index
    %c0_117 = arith.constant 0 : index
    %265 = vector.load %arg4[%c2, %c0_116, %c0_117] : memref<3x32x32xbf16, #tpu.memory_space<vmem>>, vector<1x32x32xbf16>
    %266 = vector.shape_cast %265 : vector<1x32x32xbf16> to vector<32x32xbf16>
    %cst_118 = arith.constant dense<0.000000e+00> : vector<8x32xf32>
    %267 = tpu.matmul %264, %266, %cst_118 {dimension_numbers = #tpu.dot_dimension_numbers<[1], [0], [0], [1], [0, 0, 1, 1], [], []>} : vector<8x32xbf16>, vector<32x32xbf16>, vector<8x32xf32> -> vector<8x32xf32>
    %c2_119 = arith.constant 2 : index
    %c0_120 = arith.constant 0 : index
    %c0_121 = arith.constant 0 : index
    %268 = vector.load %arg7[%c2_119, %c0_120, %c0_121] : memref<3x1x32xf32, #tpu.memory_space<vmem>>, vector<1x1x32xf32>
    %269 = vector.shape_cast %268 : vector<1x1x32xf32> to vector<1x32xf32>
    %270 = vector.broadcast %269 : vector<1x32xf32> to vector<8x32xf32>
    %271 = arith.addf %267, %270 : vector<8x32xf32>
    %c2_122 = arith.constant 2 : index
    %c0_123 = arith.constant 0 : index
    %c0_124 = arith.constant 0 : index
    %272 = vector.load %arg5[%c2_122, %c0_123, %c0_124] : memref<3x32x32xbf16, #tpu.memory_space<vmem>>, vector<1x32x32xbf16>
    %273 = vector.shape_cast %272 : vector<1x32x32xbf16> to vector<32x32xbf16>
    %cst_125 = arith.constant dense<0.000000e+00> : vector<8x32xf32>
    %274 = tpu.matmul %3, %273, %cst_125 {dimension_numbers = #tpu.dot_dimension_numbers<[1], [0], [0], [1], [0, 0, 1, 1], [], []>} : vector<8x32xbf16>, vector<32x32xbf16>, vector<8x32xf32> -> vector<8x32xf32>
    %c2_126 = arith.constant 2 : index
    %c0_127 = arith.constant 0 : index
    %c0_128 = arith.constant 0 : index
    %275 = vector.load %arg8[%c2_126, %c0_127, %c0_128] : memref<3x1x32xf32, #tpu.memory_space<vmem>>, vector<1x1x32xf32>
    %276 = vector.shape_cast %275 : vector<1x1x32xf32> to vector<1x32xf32>
    %277 = vector.broadcast %276 : vector<1x32xf32> to vector<8x32xf32>
    %278 = arith.addf %274, %277 : vector<8x32xf32>
    %c2_129 = arith.constant 2 : index
    %c0_130 = arith.constant 0 : index
    %c0_131 = arith.constant 0 : index
    %279 = vector.load %arg6[%c2_129, %c0_130, %c0_131] : memref<3x32x32xbf16, #tpu.memory_space<vmem>>, vector<1x32x32xbf16>
    %280 = vector.shape_cast %279 : vector<1x32x32xbf16> to vector<32x32xbf16>
    %cst_132 = arith.constant dense<0.000000e+00> : vector<8x32xf32>
    %281 = tpu.matmul %3, %280, %cst_132 {dimension_numbers = #tpu.dot_dimension_numbers<[1], [0], [0], [1], [0, 0, 1, 1], [], []>} : vector<8x32xbf16>, vector<32x32xbf16>, vector<8x32xf32> -> vector<8x32xf32>
    %c2_133 = arith.constant 2 : index
    %c0_134 = arith.constant 0 : index
    %c0_135 = arith.constant 0 : index
    %282 = vector.load %arg9[%c2_133, %c0_134, %c0_135] : memref<3x1x32xf32, #tpu.memory_space<vmem>>, vector<1x1x32xf32>
    %283 = vector.shape_cast %282 : vector<1x1x32xf32> to vector<1x32xf32>
    %284 = vector.broadcast %283 : vector<1x32xf32> to vector<8x32xf32>
    %285 = arith.addf %281, %284 : vector<8x32xf32>
    %286 = arith.truncf %271 : vector<8x32xf32> to vector<8x32xbf16>
    %287 = arith.truncf %278 : vector<8x32xf32> to vector<8x32xbf16>
    %288 = arith.truncf %285 : vector<8x32xf32> to vector<8x32xbf16>
    %289 = vector.extract_strided_slice %286 {offsets = [0, 0], sizes = [8, 8], strides = [1, 1]} : vector<8x32xbf16> to vector<8x8xbf16>
    %290 = vector.extract_strided_slice %287 {offsets = [0, 0], sizes = [8, 8], strides = [1, 1]} : vector<8x32xbf16> to vector<8x8xbf16>
    %cst_136 = arith.constant dense<0.000000e+00> : vector<8x8xf32>
    %291 = tpu.matmul %289, %290, %cst_136 {dimension_numbers = #tpu.dot_dimension_numbers<[1], [1], [0], [0], [0, 0, 1, 0], [], []>} : vector<8x8xbf16>, vector<8x8xbf16>, vector<8x8xf32> -> vector<8x8xf32>
    %292 = vector.broadcast %5 : vector<1x8xf32> to vector<8x8xf32>
    %293 = arith.addf %291, %292 : vector<8x8xf32>
    %cst_137 = arith.constant dense<0xFF800000> : vector<8xf32>
    %294 = vector.multi_reduction <maximumf>, %293, %cst_137 [1] : vector<8x8xf32> to vector<8xf32>
    %295 = vector.shape_cast %294 : vector<8xf32> to vector<8x1xf32>
    %296 = vector.broadcast %295 : vector<8x1xf32> to vector<8x8xf32>
    %297 = arith.subf %293, %296 : vector<8x8xf32>
    %298 = math.exp %297 : vector<8x8xf32>
    %cst_138 = arith.constant dense<0.000000e+00> : vector<8xf32>
    %299 = vector.multi_reduction <add>, %298, %cst_138 [1] : vector<8x8xf32> to vector<8xf32>
    %300 = vector.shape_cast %299 : vector<8xf32> to vector<8x1xf32>
    %301 = vector.broadcast %300 : vector<8x1xf32> to vector<8x8xf32>
    %302 = arith.divf %298, %301 : vector<8x8xf32>
    %303 = arith.truncf %302 : vector<8x8xf32> to vector<8x8xbf16>
    %304 = vector.extract_strided_slice %288 {offsets = [0, 0], sizes = [8, 8], strides = [1, 1]} : vector<8x32xbf16> to vector<8x8xbf16>
    %cst_139 = arith.constant dense<0.000000e+00> : vector<8x8xf32>
    %305 = tpu.matmul %303, %304, %cst_139 {dimension_numbers = #tpu.dot_dimension_numbers<[1], [0], [0], [1], [0, 0, 1, 1], [], []>} : vector<8x8xbf16>, vector<8x8xbf16>, vector<8x8xf32> -> vector<8x8xf32>
    %306 = vector.extract_strided_slice %286 {offsets = [0, 8], sizes = [8, 8], strides = [1, 1]} : vector<8x32xbf16> to vector<8x8xbf16>
    %307 = vector.extract_strided_slice %287 {offsets = [0, 8], sizes = [8, 8], strides = [1, 1]} : vector<8x32xbf16> to vector<8x8xbf16>
    %cst_140 = arith.constant dense<0.000000e+00> : vector<8x8xf32>
    %308 = tpu.matmul %306, %307, %cst_140 {dimension_numbers = #tpu.dot_dimension_numbers<[1], [1], [0], [0], [0, 0, 1, 0], [], []>} : vector<8x8xbf16>, vector<8x8xbf16>, vector<8x8xf32> -> vector<8x8xf32>
    %309 = vector.broadcast %5 : vector<1x8xf32> to vector<8x8xf32>
    %310 = arith.addf %308, %309 : vector<8x8xf32>
    %cst_141 = arith.constant dense<0xFF800000> : vector<8xf32>
    %311 = vector.multi_reduction <maximumf>, %310, %cst_141 [1] : vector<8x8xf32> to vector<8xf32>
    %312 = vector.shape_cast %311 : vector<8xf32> to vector<8x1xf32>
    %313 = vector.broadcast %312 : vector<8x1xf32> to vector<8x8xf32>
    %314 = arith.subf %310, %313 : vector<8x8xf32>
    %315 = math.exp %314 : vector<8x8xf32>
    %cst_142 = arith.constant dense<0.000000e+00> : vector<8xf32>
    %316 = vector.multi_reduction <add>, %315, %cst_142 [1] : vector<8x8xf32> to vector<8xf32>
    %317 = vector.shape_cast %316 : vector<8xf32> to vector<8x1xf32>
    %318 = vector.broadcast %317 : vector<8x1xf32> to vector<8x8xf32>
    %319 = arith.divf %315, %318 : vector<8x8xf32>
    %320 = arith.truncf %319 : vector<8x8xf32> to vector<8x8xbf16>
    %321 = vector.extract_strided_slice %288 {offsets = [0, 8], sizes = [8, 8], strides = [1, 1]} : vector<8x32xbf16> to vector<8x8xbf16>
    %cst_143 = arith.constant dense<0.000000e+00> : vector<8x8xf32>
    %322 = tpu.matmul %320, %321, %cst_143 {dimension_numbers = #tpu.dot_dimension_numbers<[1], [0], [0], [1], [0, 0, 1, 1], [], []>} : vector<8x8xbf16>, vector<8x8xbf16>, vector<8x8xf32> -> vector<8x8xf32>
    %323 = vector.extract_strided_slice %286 {offsets = [0, 16], sizes = [8, 8], strides = [1, 1]} : vector<8x32xbf16> to vector<8x8xbf16>
    %324 = vector.extract_strided_slice %287 {offsets = [0, 16], sizes = [8, 8], strides = [1, 1]} : vector<8x32xbf16> to vector<8x8xbf16>
    %cst_144 = arith.constant dense<0.000000e+00> : vector<8x8xf32>
    %325 = tpu.matmul %323, %324, %cst_144 {dimension_numbers = #tpu.dot_dimension_numbers<[1], [1], [0], [0], [0, 0, 1, 0], [], []>} : vector<8x8xbf16>, vector<8x8xbf16>, vector<8x8xf32> -> vector<8x8xf32>
    %326 = vector.broadcast %5 : vector<1x8xf32> to vector<8x8xf32>
    %327 = arith.addf %325, %326 : vector<8x8xf32>
    %cst_145 = arith.constant dense<0xFF800000> : vector<8xf32>
    %328 = vector.multi_reduction <maximumf>, %327, %cst_145 [1] : vector<8x8xf32> to vector<8xf32>
    %329 = vector.shape_cast %328 : vector<8xf32> to vector<8x1xf32>
    %330 = vector.broadcast %329 : vector<8x1xf32> to vector<8x8xf32>
    %331 = arith.subf %327, %330 : vector<8x8xf32>
    %332 = math.exp %331 : vector<8x8xf32>
    %cst_146 = arith.constant dense<0.000000e+00> : vector<8xf32>
    %333 = vector.multi_reduction <add>, %332, %cst_146 [1] : vector<8x8xf32> to vector<8xf32>
    %334 = vector.shape_cast %333 : vector<8xf32> to vector<8x1xf32>
    %335 = vector.broadcast %334 : vector<8x1xf32> to vector<8x8xf32>
    %336 = arith.divf %332, %335 : vector<8x8xf32>
    %337 = arith.truncf %336 : vector<8x8xf32> to vector<8x8xbf16>
    %338 = vector.extract_strided_slice %288 {offsets = [0, 16], sizes = [8, 8], strides = [1, 1]} : vector<8x32xbf16> to vector<8x8xbf16>
    %cst_147 = arith.constant dense<0.000000e+00> : vector<8x8xf32>
    %339 = tpu.matmul %337, %338, %cst_147 {dimension_numbers = #tpu.dot_dimension_numbers<[1], [0], [0], [1], [0, 0, 1, 1], [], []>} : vector<8x8xbf16>, vector<8x8xbf16>, vector<8x8xf32> -> vector<8x8xf32>
    %340 = vector.extract_strided_slice %286 {offsets = [0, 24], sizes = [8, 8], strides = [1, 1]} : vector<8x32xbf16> to vector<8x8xbf16>
    %341 = vector.extract_strided_slice %287 {offsets = [0, 24], sizes = [8, 8], strides = [1, 1]} : vector<8x32xbf16> to vector<8x8xbf16>
    %cst_148 = arith.constant dense<0.000000e+00> : vector<8x8xf32>
    %342 = tpu.matmul %340, %341, %cst_148 {dimension_numbers = #tpu.dot_dimension_numbers<[1], [1], [0], [0], [0, 0, 1, 0], [], []>} : vector<8x8xbf16>, vector<8x8xbf16>, vector<8x8xf32> -> vector<8x8xf32>
    %343 = vector.broadcast %5 : vector<1x8xf32> to vector<8x8xf32>
    %344 = arith.addf %342, %343 : vector<8x8xf32>
    %cst_149 = arith.constant dense<0xFF800000> : vector<8xf32>
    %345 = vector.multi_reduction <maximumf>, %344, %cst_149 [1] : vector<8x8xf32> to vector<8xf32>
    %346 = vector.shape_cast %345 : vector<8xf32> to vector<8x1xf32>
    %347 = vector.broadcast %346 : vector<8x1xf32> to vector<8x8xf32>
    %348 = arith.subf %344, %347 : vector<8x8xf32>
    %349 = math.exp %348 : vector<8x8xf32>
    %cst_150 = arith.constant dense<0.000000e+00> : vector<8xf32>
    %350 = vector.multi_reduction <add>, %349, %cst_150 [1] : vector<8x8xf32> to vector<8xf32>
    %351 = vector.shape_cast %350 : vector<8xf32> to vector<8x1xf32>
    %352 = vector.broadcast %351 : vector<8x1xf32> to vector<8x8xf32>
    %353 = arith.divf %349, %352 : vector<8x8xf32>
    %354 = arith.truncf %353 : vector<8x8xf32> to vector<8x8xbf16>
    %355 = vector.extract_strided_slice %288 {offsets = [0, 24], sizes = [8, 8], strides = [1, 1]} : vector<8x32xbf16> to vector<8x8xbf16>
    %cst_151 = arith.constant dense<0.000000e+00> : vector<8x8xf32>
    %356 = tpu.matmul %354, %355, %cst_151 {dimension_numbers = #tpu.dot_dimension_numbers<[1], [0], [0], [1], [0, 0, 1, 1], [], []>} : vector<8x8xbf16>, vector<8x8xbf16>, vector<8x8xf32> -> vector<8x8xf32>
    %357 = tpu.concatenate %305, %322, %339, %356 in 1 : vector<8x8xf32>, vector<8x8xf32>, vector<8x8xf32>, vector<8x8xf32> -> vector<8x32xf32>
    %358 = arith.truncf %357 : vector<8x32xf32> to vector<8x32xbf16>
    %c2_152 = arith.constant 2 : index
    %c0_153 = arith.constant 0 : index
    %c0_154 = arith.constant 0 : index
    %359 = vector.load %arg10[%c2_152, %c0_153, %c0_154] : memref<3x32x32xbf16, #tpu.memory_space<vmem>>, vector<1x32x32xbf16>
    %360 = vector.shape_cast %359 : vector<1x32x32xbf16> to vector<32x32xbf16>
    %cst_155 = arith.constant dense<0.000000e+00> : vector<8x32xf32>
    %361 = tpu.matmul %358, %360, %cst_155 {dimension_numbers = #tpu.dot_dimension_numbers<[1], [0], [0], [1], [0, 0, 1, 1], [], []>} : vector<8x32xbf16>, vector<32x32xbf16>, vector<8x32xf32> -> vector<8x32xf32>
    %c2_156 = arith.constant 2 : index
    %c0_157 = arith.constant 0 : index
    %c0_158 = arith.constant 0 : index
    %362 = vector.load %arg11[%c2_156, %c0_157, %c0_158] : memref<3x1x32xf32, #tpu.memory_space<vmem>>, vector<1x1x32xf32>
    %363 = vector.shape_cast %362 : vector<1x1x32xf32> to vector<1x32xf32>
    %364 = vector.broadcast %363 : vector<1x32xf32> to vector<8x32xf32>
    %365 = arith.addf %361, %364 : vector<8x32xf32>
    %366 = arith.addf %263, %365 : vector<8x32xf32>
    %cst_159 = arith.constant dense<0.000000e+00> : vector<8xf32>
    %367 = vector.multi_reduction <add>, %366, %cst_159 [1] : vector<8x32xf32> to vector<8xf32>
    %368 = vector.shape_cast %367 : vector<8xf32> to vector<8x1xf32>
    %cst_160 = arith.constant 3.200000e+01 : f32
    %369 = vector.broadcast %cst_160 : f32 to vector<8x1xf32>
    %370 = arith.divf %368, %369 : vector<8x1xf32>
    %371 = vector.broadcast %370 : vector<8x1xf32> to vector<8x32xf32>
    %372 = arith.subf %366, %371 : vector<8x32xf32>
    %373 = arith.mulf %372, %372 : vector<8x32xf32>
    %cst_161 = arith.constant dense<0.000000e+00> : vector<8xf32>
    %374 = vector.multi_reduction <add>, %373, %cst_161 [1] : vector<8x32xf32> to vector<8xf32>
    %375 = vector.shape_cast %374 : vector<8xf32> to vector<8x1xf32>
    %cst_162 = arith.constant 3.200000e+01 : f32
    %376 = vector.broadcast %cst_162 : f32 to vector<8x1xf32>
    %377 = arith.divf %375, %376 : vector<8x1xf32>
    %378 = vector.broadcast %370 : vector<8x1xf32> to vector<8x32xf32>
    %379 = arith.subf %366, %378 : vector<8x32xf32>
    %cst_163 = arith.constant 9.99999974E-6 : f32
    %380 = vector.broadcast %cst_163 : f32 to vector<8x1xf32>
    %381 = arith.addf %377, %380 : vector<8x1xf32>
    %382 = math.rsqrt %381 : vector<8x1xf32>
    %383 = vector.broadcast %382 : vector<8x1xf32> to vector<8x32xf32>
    %384 = arith.mulf %379, %383 : vector<8x32xf32>
    %c2_164 = arith.constant 2 : index
    %c0_165 = arith.constant 0 : index
    %c0_166 = arith.constant 0 : index
    %385 = vector.load %arg12[%c2_164, %c0_165, %c0_166] : memref<3x1x32xf32, #tpu.memory_space<vmem>>, vector<1x1x32xf32>
    %386 = vector.shape_cast %385 : vector<1x1x32xf32> to vector<1x32xf32>
    %387 = vector.broadcast %386 : vector<1x32xf32> to vector<8x32xf32>
    %388 = arith.mulf %384, %387 : vector<8x32xf32>
    %c2_167 = arith.constant 2 : index
    %c0_168 = arith.constant 0 : index
    %c0_169 = arith.constant 0 : index
    %389 = vector.load %arg13[%c2_167, %c0_168, %c0_169] : memref<3x1x32xf32, #tpu.memory_space<vmem>>, vector<1x1x32xf32>
    %390 = vector.shape_cast %389 : vector<1x1x32xf32> to vector<1x32xf32>
    %391 = vector.broadcast %390 : vector<1x32xf32> to vector<8x32xf32>
    %392 = arith.addf %388, %391 : vector<8x32xf32>
    %393 = arith.truncf %392 : vector<8x32xf32> to vector<8x32xbf16>
    %c0_170 = arith.constant 0 : index
    %c0_171 = arith.constant 0 : index
    %394 = vector.load %arg14[%c0_170, %c0_171] : memref<32x256xbf16, #tpu.memory_space<vmem>>, vector<32x256xbf16>
    %cst_172 = arith.constant dense<0.000000e+00> : vector<8x256xf32>
    %395 = tpu.matmul %393, %394, %cst_172 {dimension_numbers = #tpu.dot_dimension_numbers<[1], [0], [0], [1], [0, 0, 1, 1], [], []>} : vector<8x32xbf16>, vector<32x256xbf16>, vector<8x256xf32> -> vector<8x256xf32>
    %c0_173 = arith.constant 0 : index
    %c0_174 = arith.constant 0 : index
    %396 = vector.load %arg15[%c0_173, %c0_174] : memref<1x256xf32, #tpu.memory_space<vmem>>, vector<1x256xf32>
    %397 = vector.broadcast %396 : vector<1x256xf32> to vector<8x256xf32>
    %398 = arith.addf %395, %397 : vector<8x256xf32>
    %c0_175 = arith.constant 0 : index
    %c0_176 = arith.constant 0 : index
    %c0_177 = arith.constant 0 : index
    %399 = vector.load %arg16[%c0_175, %c0_176, %c0_177] : memref<1x8x256xf32, #tpu.memory_space<vmem>>, vector<1x8x256xf32>
    %400 = vector.shape_cast %399 : vector<1x8x256xf32> to vector<8x256xf32>
    %401 = vector.shape_cast %398 : vector<8x256xf32> to vector<1x8x256xf32>
    tpu.vector_store %arg16[%c0_175, %c0_176, %c0_177], %401 {strides = array<i32>} : memref<1x8x256xf32, #tpu.memory_space<vmem>>, vector<1x8x256xf32>,
    return
  }
  func.func @transform_0(%arg0: i32) -> (i32, i32, i32) {
    %c0_i32 = arith.constant 0 : i32
    %c0_i32_0 = arith.constant 0 : i32
    %c0_i32_1 = arith.constant 0 : i32
    return %arg0, %c0_i32, %c0_i32_0 : i32, i32, i32
  }
  func.func @transform_1(%arg0: i32) -> (i32, i32, i32) {
    %c0_i32 = arith.constant 0 : i32
    %c0_i32_0 = arith.constant 0 : i32
    %c0_i32_1 = arith.constant 0 : i32
    return %arg0, %c0_i32, %c0_i32_0 : i32, i32, i32
  }
  func.func @transform_2(%arg0: i32) -> (i32, i32, i32) {
    %c0_i32 = arith.constant 0 : i32
    %c0_i32_0 = arith.constant 0 : i32
    %c0_i32_1 = arith.constant 0 : i32
    return %arg0, %c0_i32, %c0_i32_0 : i32, i32, i32
  }
  func.func @transform_3(%arg0: i32) -> (i32, i32, i32) {
    %c0_i32 = arith.constant 0 : i32
    %c0_i32_0 = arith.constant 0 : i32
    %c0_i32_1 = arith.constant 0 : i32
    %c0_i32_2 = arith.constant 0 : i32
    return %c0_i32, %c0_i32_0, %c0_i32_1 : i32, i32, i32
  }
  func.func @transform_4(%arg0: i32) -> (i32, i32, i32) {
    %c0_i32 = arith.constant 0 : i32
    %c0_i32_0 = arith.constant 0 : i32
    %c0_i32_1 = arith.constant 0 : i32
    %c0_i32_2 = arith.constant 0 : i32
    return %c0_i32, %c0_i32_0, %c0_i32_1 : i32, i32, i32
  }
  func.func @transform_5(%arg0: i32) -> (i32, i32, i32) {
    %c0_i32 = arith.constant 0 : i32
    %c0_i32_0 = arith.constant 0 : i32
    %c0_i32_1 = arith.constant 0 : i32
    %c0_i32_2 = arith.constant 0 : i32
    return %c0_i32, %c0_i32_0, %c0_i32_1 : i32, i32, i32
  }
  func.func @transform_6(%arg0: i32) -> (i32, i32, i32) {
    %c0_i32 = arith.constant 0 : i32
    %c0_i32_0 = arith.constant 0 : i32
    %c0_i32_1 = arith.constant 0 : i32
    %c0_i32_2 = arith.constant 0 : i32
    return %c0_i32, %c0_i32_0, %c0_i32_1 : i32, i32, i32
  }
  func.func @transform_7(%arg0: i32) -> (i32, i32, i32) {
    %c0_i32 = arith.constant 0 : i32
    %c0_i32_0 = arith.constant 0 : i32
    %c0_i32_1 = arith.constant 0 : i32
    %c0_i32_2 = arith.constant 0 : i32
    return %c0_i32, %c0_i32_0, %c0_i32_1 : i32, i32, i32
  }
  func.func @transform_8(%arg0: i32) -> (i32, i32, i32) {
    %c0_i32 = arith.constant 0 : i32
    %c0_i32_0 = arith.constant 0 : i32
    %c0_i32_1 = arith.constant 0 : i32
    %c0_i32_2 = arith.constant 0 : i32
    return %c0_i32, %c0_i32_0, %c0_i32_1 : i32, i32, i32
  }
  func.func @transform_9(%arg0: i32) -> (i32, i32, i32) {
    %c0_i32 = arith.constant 0 : i32
    %c0_i32_0 = arith.constant 0 : i32
    %c0_i32_1 = arith.constant 0 : i32
    %c0_i32_2 = arith.constant 0 : i32
    return %c0_i32, %c0_i32_0, %c0_i32_1 : i32, i32, i32
  }
  func.func @transform_10(%arg0: i32) -> (i32, i32, i32) {
    %c0_i32 = arith.constant 0 : i32
    %c0_i32_0 = arith.constant 0 : i32
    %c0_i32_1 = arith.constant 0 : i32
    %c0_i32_2 = arith.constant 0 : i32
    return %c0_i32, %c0_i32_0, %c0_i32_1 : i32, i32, i32
  }
  func.func @transform_11(%arg0: i32) -> (i32, i32, i32) {
    %c0_i32 = arith.constant 0 : i32
    %c0_i32_0 = arith.constant 0 : i32
    %c0_i32_1 = arith.constant 0 : i32
    %c0_i32_2 = arith.constant 0 : i32
    return %c0_i32, %c0_i32_0, %c0_i32_1 : i32, i32, i32
  }
  func.func @transform_12(%arg0: i32) -> (i32, i32, i32) {
    %c0_i32 = arith.constant 0 : i32
    %c0_i32_0 = arith.constant 0 : i32
    %c0_i32_1 = arith.constant 0 : i32
    %c0_i32_2 = arith.constant 0 : i32
    return %c0_i32, %c0_i32_0, %c0_i32_1 : i32, i32, i32
  }
  func.func @transform_13(%arg0: i32) -> (i32, i32) {
    %c0_i32 = arith.constant 0 : i32
    %c0_i32_0 = arith.constant 0 : i32
    %c0_i32_1 = arith.constant 0 : i32
    return %c0_i32, %c0_i32_0 : i32, i32
  }
  func.func @transform_14(%arg0: i32) -> (i32, i32) {
    %c0_i32 = arith.constant 0 : i32
    %c0_i32_0 = arith.constant 0 : i32
    %c0_i32_1 = arith.constant 0 : i32
    return %c0_i32, %c0_i32_0 : i32, i32
  }
  func.func @transform_15(%arg0: i32) -> (i32, i32, i32) {
    %c0_i32 = arith.constant 0 : i32
    %c0_i32_0 = arith.constant 0 : i32
    %c0_i32_1 = arith.constant 0 : i32
    return %arg0, %c0_i32, %c0_i32_0 : i32, i32, i32
  }
}

</mosaic_0001>

<bundles_post_ra>
// kernel: tpu_custom_call.1
= control target key start
LH: loop header
LB: loop body
LE: loop exit
PB: predicated region body
PF: predicated region fallthrough
CT: control target
= control target key end

     0   :  { %s4993_s0 = inlined_call_operand.hbm [shape: f32[2,8,32], index: 0, kind: input, shape index: {}]   ;;  %s4994_s1 = inlined_call_operand.hbm [shape: bf16[2,8,32], index: 1, kind: input, shape index: {}]   ;;  %s4995_s2 = inlined_call_operand.hbm [shape: f32[2,1,8], index: 2, kind: input, shape index: {}]   ;;  %s4996_s3 = inlined_call_operand.hbm [shape: bf16[3,32,32], index: 3, kind: input, shape index: {}]   ;;  %s4997_s4 = inlined_call_operand.hbm [shape: bf16[3,32,32], index: 4, kind: input, shape index: {}]   ;;  %s4998_s5 = inlined_call_operand.hbm [shape: bf16[3,32,32], index: 5, kind: input, shape index: {}]   ;;  %s4999_s6 = inlined_call_operand.vmem [shape: f32[3,1,32], index: 6, kind: input, shape index: {}]   ;;  %s5000_s7 = inlined_call_operand.vmem [shape: f32[3,1,32], index: 7, kind: input, shape index: {}]   ;;  %s5001_s8 = inlined_call_operand.vmem [shape: f32[3,1,32], index: 8, kind: input, shape index: {}]   ;;  %s5002_s9 = inlined_call_operand.hbm [shape: bf16[3,32,32], index: 9, kind: input, shape index: {}]   ;;  %s5003_s10 = inlined_call_operand.vmem [shape: f32[3,1,32], index: 10, kind: input, shape index: {}]   ;;  %s5004_s11 = inlined_call_operand.vmem [shape: f32[3,1,32], index: 11, kind: input, shape index: {}]   ;;  %s5005_s12 = inlined_call_operand.hbm [shape: f32[3,1,32], index: 12, kind: input, shape index: {}]   ;;  %s5006_s13 = inlined_call_operand.vmem [shape: bf16[32,256], index: 13, kind: input, shape index: {}]   ;;  %s5007_s14 = inlined_call_operand.vmem [shape: f32[1,256], index: 14, kind: input, shape index: {}]   ;;  %s5008_s15 = inlined_call_operand.hbm [shape: f32[2,8,256], index: 15, kind: output, shape index: {}]  }
   0x1   :  { %5037 = sst [smem:[#allocation29_spill]] %s4994_s1 }
   0x2   :  { %5038 = sst [smem:[#allocation30_spill]] %s4996_s3 }
   0x3   :  { %5039 = sst [smem:[#allocation31_spill]] %s4997_s4 }
   0x4   :  { %5040 = sst [smem:[#allocation32_spill]] %s4998_s5 }
   0x5   :  { %5041 = sst [smem:[#allocation33_spill]] %s5001_s8 }
   0x6   :  { %5042 = sst [smem:[#allocation34_spill]] %s5003_s10 }
   0x7   :  { %5043 = sst [smem:[#allocation35_spill]] %s5004_s11 }
   0x8   :  { %5044 = sst [smem:[#allocation36_spill]] %s5006_s13 }
   0x9   :  { %5045 = sst [smem:[#allocation37_spill]] %s5007_s14 }
   0xa   :  { %5046 = sst [smem:[#allocation38_spill]] %s5008_s15 }
   0xb   :  { %20 = vsyncpa [#allocation3], 0 }
   0xc   :  { %22 = vsyncpa [#allocation3 + $0x1], 0 }
   0xd   :  { %23 = vsyncpa [#allocation6], 0 }
   0xe   :  { %25 = vsyncpa [#allocation6 + $0x1], 0 }
   0xf   :  { %26 = vsyncpa [#allocation9], 0 }
  0x10   :  { %27 = vsyncpa [#allocation12], 0 }
  0x11   :  { %28 = vsyncpa [#allocation15], 0 }
  0x12   :  { %29 = vsyncpa [#allocation4], 0 }
  0x13   :  { %31 = vsyncpa [#allocation4 + $0x1], 0  ;;  %s4249_s18 = smov 0   ;;  %s4251_s19 = smov 0  }
  0x14   :  { %s4253_s20 = smov 0   ;;  %s4255_s21 = smov 0  }
  0x15 LB: > { %5047 = sst [smem:[#allocation23_spill]] %s4133_s18  ;;  %s4147_s22 = smov [#allocation8]   ;;  %s4145_s21 = sphi %s4255_s21, %s5092_s21   ;;  %s4141_s20 = sphi %s4253_s20, %s5094_s20   ;;  %s4137_s19 = sphi %s4251_s19, %s5096_s19   ;;  %s4133_s18 = sphi %s4249_s18, %s5095_s18  }
  0x16   : > { %5048 = sst [smem:[#allocation24_spill]] %s4141_s20  ;;  %s410_s23 = sshll.u32 %s4147_s22, 4  ;;  %s4275_s23 = int_to_ptr.vmem [resolvable:$true] %s410_s23 }
  0x17   : > { %s4270_s24 = sadd.s32 4294967295, %s4145_s21   ;;  %p3182_p0 = scmp.ge.s32.totalorder %s4145_s21, 1 }
  0x18   : > { %p5022_p1 = scmp.eq.s32.totalorder %s4270_s24, 0  ;;  %p398_p2 = scmp.lt.s32.totalorder %s4145_s21, 3 }
  0x19   : > { %s4148_s26 = smov [#allocation11]   ;;  %s5051_s3 = sld [smem:[#allocation30_spill]] }
  0x1a   : > { %p4277_p3 = pnand %p3182_p0, %p398_p2  ;;  %s436_s27 = sshll.u32 %s4148_s26, 4  ;;  %s4290_s27 = int_to_ptr.vmem [resolvable:$true] %s436_s27 }
  0x1c   : > { %s5049_s25 = scalar_select %p4277_p3, 1, 0 }
  0x1d   : > { %p3655_p5 = pneg %p4277_p3 }
  0x1f   : > { %p4286_p6 = pnand %p3655_p5, %p5022_p1  ;;  %s3833_s16 = scalar_lea.hbm %s5051_s3, 768 }
  0x20   : > { %p3834_p7 = scmp.ne.s32.totalorder %s5051_s3, %s3833_s16  ;;  %p3840_p11 = scmp.lt.u32.totalorder %s3833_s16, %s5051_s3 }
  0x21   : > { %s5050_s28 = scalar_select %p4286_p6, 1, 0 }
  0x22   : > { %p4300_p8 = pneg %p4286_p6 }
  0x24   : > { %s5052_s15 = scalar_select %p4300_p8, 1, 0 }
  0x25   : > { %p3836_p9 = pnand %p4300_p8, %p3834_p7 }
  0x27   : > { %p3837_p10 = pneg %p3836_p9 }
  0x29   : > { %p3842_p12 = pnand %p3840_p11, %p3837_p10 }
  0x2b   : > { %3845 = shalt.err (!%p3842_p12)
}
  0x2c   : > { %s3846_s29 = scalar_lea.vmem %s4275_s23, 768  ;;  %p3854_p5 = scmp.lt.s32.totalorder %s4275_s23, %s4275_s23 }
  0x2d   : > { %p3847_p13 = scmp.ne.s32.totalorder %s4275_s23, %s3846_s29  ;;  %p3855_p4 = scmp.lt.s32.totalorder %s3846_s29, %s3846_s29 }
  0x2f   : > { %p3849_p0 = pnand %p3847_p13, %p4300_p8  ;;  %p3856_p7 = por %p3855_p4, %p3854_p5 }
  0x31   : > { %p3850_p2 = pneg %p3849_p0 }
  0x33   : > { %p3857_p9 = pnand %p3856_p7, %p3850_p2 }
  0x35   : > { %3860 = shalt.err (!%p3857_p9)
}
  0x36   : > { %s5015_s30 = smov 64   ;;  %s5017_s14 = smov 4  }
  0x37   : > { %3658 = dma.hbm_to_vmem [thread:$0]  (!%p4286_p6), %s5051_s3, 768, %s4275_s23, [#allocation9], %s5015_s30, %s5015_s30, %s5017_s14  }
  0x38   : > { %s5053_s5 = sld [smem:[#allocation32_spill]] }
  0x3e   : > { %s3861_s29 = scalar_lea.hbm %s5053_s5, 768 }
  0x3f   : > { %p3862_p4 = scmp.ne.s32.totalorder %s5053_s5, %s3861_s29  ;;  %p3868_p12 = scmp.lt.u32.totalorder %s3861_s29, %s5053_s5 }
  0x41   : > { %p3864_p10 = pnand %p3862_p4, %p4300_p8 }
  0x43   : > { %p3865_p11 = pneg %p3864_p10 }
  0x45   : > { %p3870_p13 = pnand %p3868_p12, %p3865_p11 }
  0x47   : > { %3873 = shalt.err (!%p3870_p13)
}
  0x48   : > { %s3874_s23 = scalar_lea.vmem %s4290_s27, 768  ;;  %p3882_p7 = scmp.lt.s32.totalorder %s4290_s27, %s4290_s27 }
  0x49   : > { %p3875_p0 = scmp.ne.s32.totalorder %s4290_s27, %s3874_s23  ;;  %p3883_p9 = scmp.lt.s32.totalorder %s3874_s23, %s3874_s23 }
  0x4b   : > { %p3877_p2 = pnand %p3875_p0, %p4300_p8  ;;  %p3884_p4 = por %p3883_p9, %p3882_p7 }
  0x4d   : > { %p3878_p5 = pneg %p3877_p2 }
  0x4f   : > { %p3885_p10 = pnand %p3884_p4, %p3878_p5 }
  0x51   : > { %3888 = shalt.err (!%p3885_p10)
}
  0x52   : > { %3664 = dma.hbm_to_vmem [thread:$0]  (!%p4286_p6), %s5053_s5, 768, %s4290_s27, [#allocation12], %s5015_s30, %s5015_s30, %s5017_s14  }
  0x53   : > { %s3181_s11 = sadd.s32 4294967294, %s4145_s21   ;;  %s4352_s13 = sadd.s32 1, %s4145_s21  }
  0x54   : > { %5054 = sst [smem:[#allocation25_spill]] %s4352_s13  ;;  %s41_s16 = ssub.s32 %s4145_s21, %s4352_s13 }
  0x55   : > { %s44_s17 = sadd.s32 1, %s4141_s20  ;;  %p42_p11 = scmp.eq.s32.totalorder %s41_s16, 0 }
  0x56   : > { %p51_p12 = scmp.ne.s32.totalorder %s4141_s20, %s4137_s19  ;;  %p52_p13 = scmp.eq.s32.totalorder %s4145_s21, 0 }
  0x57   : > { %p57_p0 = scmp.ne.s32.totalorder %s4137_s19, %s4133_s18  ;;  %p385_p7 = scmp.eq.s32.totalorder %s4270_s24, 1 }
  0x58   : > { %s4363_s22 = scalar_select %p42_p11, %s4141_s20, %s44_s17  }
  0x59   : > { %p53_p2 = por %p52_p13, %p51_p12  ;;  %p4367_p5 = por %p5022_p1, %p57_p0 }
  0x5a   : > { %5055 = sst [smem:[#allocation26_spill]] %s4363_s22  ;;  %p391_p9 = scmp.eq.s32.totalorder %s3181_s11, 1 }
  0x5b   : > { %s5056_s26 = scalar_select %p4367_p5, 1, 0 }
  0x5c   : > { %p3690_p4 = scmp.lt.s32.totalorder %s4145_s21, 2  ;;  %s4374_s27 = sand.u32 1, %s4141_s20  }
  0x5d   : > { %p4376_p10 = por %p385_p7, %p51_p12  ;;  %p4380_p3 = por %p391_p9, %p57_p0 }
  0x5e   : > { %p4384_p11 = pnand %p3690_p4, %p53_p2  ;;  %s515_s10 = sand.u32 1, %s4145_s21  }
  0x5f   : > { %s5057_s29 = scalar_select %p4376_p10, 1, 0 }
  0x60   : > { %s5059_s23 = scalar_select %p4380_p3, 1, 0 }
  0x61   : > { %5058 = sst [smem:[#allocation27_spill]] %s5057_s29  ;;  %s3191_s16 = sshll.u32 %s4374_s27, 2 }
  0x62   : > { %5060 = sst [smem:[#allocation28_spill]] %s5059_s23  ;;  %s3192_s11 = sshll.u32 %s4145_s21, 6 }
  0x63   : > { %s5061_s8 = scalar_select %p4384_p11, 1, 0 }
  0x64   : > { %s519_s17 = scalar_lea.vmem [#allocation5], %s3191_s16  ;;  %s5062_s1 = sld [smem:[#allocation29_spill]] }
  0x65   : > { %s526_s30 = sshll.u32 %s519_s17, 4  ;;  %s4398_s22 = scalar_lea.sflag [#allocation6], %s515_s10  ;;  %s4396_s30 = int_to_ptr.vmem [resolvable:$true] %s526_s30 }
  0x66   : > { %p4404_p13 = pneg %p4384_p11 }
  0x68   : > { %s5063_s13 = scalar_select %p4404_p13, 1, 0 }
  0x6a   : > { %s4394_s5 = scalar_lea.hbm %s5062_s1, %s3192_s11  ;;  %s3894_s16 = scalar_lea.hbm %s5062_s1, 128 }
  0x6b   : > { %s3889_s20 = scalar_lea.hbm %s4394_s5, 64  ;;  %p3895_p7 = scmp.lt.u32.totalorder %s4394_s5, %s5062_s1 }
  0x6c   : > { %p3890_p12 = scmp.ne.s32.totalorder %s4394_s5, %s3889_s20  ;;  %p3896_p9 = scmp.lt.u32.totalorder %s3894_s16, %s3889_s20 }
  0x6d   : > { %p3898_p1 = scmp.lt.u32.totalorder %s3889_s20, %s4394_s5 }
  0x6e   : > { %p3892_p0 = pnand %p4404_p13, %p3890_p12  ;;  %p3897_p4 = por %p3896_p9, %p3895_p7 }
  0x70   : > { %p3893_p2 = pneg %p3892_p0  ;;  %p3899_p3 = por %p3898_p1, %p3897_p4 }
  0x72   : > { %p3900_p10 = pnand %p3899_p3, %p3893_p2 }
  0x74   : > { %3903 = shalt.err (!%p3900_p10)
}
  0x75   : > { %s3904_s10 = scalar_lea.vmem %s4396_s30, 64  ;;  %s4151_s3 = smov [#allocation5]  }
  0x76   : > { %p3905_p12 = scmp.ne.s32.totalorder %s4396_s30, %s3904_s10  ;;  %s3909_s14 = sshll.u32 %s4151_s3, 4  ;;  %s3910_s14 = int_to_ptr.vmem [resolvable:$false] %s3909_s14 }
  0x77   : > { %s3911_s11 = scalar_lea.vmem %s3910_s14, 128  ;;  %p3912_p6 = scmp.lt.s32.totalorder %s4396_s30, %s3910_s14 }
  0x78   : > { %p3907_p0 = pnand %p3905_p12, %p4404_p13  ;;  %p3913_p8 = scmp.lt.s32.totalorder %s3911_s11, %s3904_s10 }
  0x7a   : > { %p3908_p5 = pneg %p3907_p0  ;;  %p3914_p7 = por %p3913_p8, %p3912_p6 }
  0x7c   : > { %p3915_p9 = pnand %p3914_p7, %p3908_p5 }
  0x7e   : > { %3918 = shalt.err (!%p3915_p9)
}
  0x7f   : > { %3677 = dma.hbm_to_vmem [thread:$0]  (!%p4384_p11), %s4394_s5, 64, %s4396_s30, %s4398_s22  }
  0x80   : > { %s4152_s20 = smov [#allocation10]   ;;  %s4153_s17 = smov [#allocation13]  }
  0x81   : > { %s423_s16 = sshll.u32 %s4152_s20, 4  ;;  %s458_s1 = sshll.u32 %s4153_s17, 4  ;;  %s424_s16 = int_to_ptr.vmem [resolvable:$true] %s423_s16  ;;  %s4428_s1 = int_to_ptr.vmem [resolvable:$true] %s458_s1 }
  0x82   : > { %s5064_s4 = sld [smem:[#allocation31_spill]]  ;;  %p5065_p3 = scmp.ne.s32.totalorder %s5052_s15, 0 }
  0x88   : > { %s3919_s10 = scalar_lea.hbm %s5064_s4, 768 }
  0x89   : > { %p3920_p1 = scmp.ne.s32.totalorder %s5064_s4, %s3919_s10  ;;  %p3926_p5 = scmp.lt.u32.totalorder %s3919_s10, %s5064_s4 }
  0x8b   : > { %p3922_p6 = pnand %p3920_p1, %p5065_p3 }
  0x8d   : > { %p3923_p8 = pneg %p3922_p6 }
  0x8f   : > { %p3928_p10 = pnand %p3926_p5, %p3923_p8 }
  0x91   : > { %3931 = shalt.err (!%p3928_p10)
}
  0x92   : > { %s3932_s30 = scalar_lea.vmem %s424_s16, 768  ;;  %p3940_p0 = scmp.lt.s32.totalorder %s424_s16, %s424_s16 }
  0x93   : > { %p3933_p2 = scmp.ne.s32.totalorder %s424_s16, %s3932_s30  ;;  %p3941_p7 = scmp.lt.s32.totalorder %s3932_s30, %s3932_s30 }
  0x95   : > { %p3935_p4 = pnand %p3933_p2, %p5065_p3  ;;  %p3942_p9 = por %p3941_p7, %p3940_p0 }
  0x97   : > { %p3936_p12 = pneg %p3935_p4 }
  0x99   : > { %p3943_p11 = pnand %p3942_p9, %p3936_p12 }
  0x9b   : > { %3946 = shalt.err (!%p3943_p11)
}
  0x9c   : > { %p5066_p1 = scmp.ne.s32.totalorder %s5050_s28, 0  ;;  %s5067_s23 = smov 4  }
  0x9d   : > { %s5068_s20 = smov 64   ;;  %s3947_s10 = scalar_lea.hbm %s5002_s9, 768 }
  0x9e   : > { %3661 = dma.hbm_to_vmem [thread:$0]  (!%p5066_p1), %s5064_s4, 768, %s424_s16, [#allocation9], %s5068_s20, %s5068_s20, %s5067_s23  }
  0x9f   : > { %p3948_p6 = scmp.ne.s32.totalorder %s5002_s9, %s3947_s10  ;;  %p3954_p5 = scmp.lt.u32.totalorder %s3947_s10, %s5002_s9 }
  0xa1   : > { %p3950_p11 = pnand %p3948_p6, %p5065_p3 }
  0xa3   : > { %p3951_p8 = pneg %p3950_p11 }
  0xa5   : > { %p3956_p10 = pnand %p3954_p5, %p3951_p8 }
  0xa7   : > { %3959 = shalt.err (!%p3956_p10)
}
  0xa8   : > { %s3960_s16 = scalar_lea.vmem %s4428_s1, 768  ;;  %p3968_p0 = scmp.lt.s32.totalorder %s4428_s1, %s4428_s1 }
  0xa9   : > { %p3961_p2 = scmp.ne.s32.totalorder %s4428_s1, %s3960_s16  ;;  %p3969_p7 = scmp.lt.s32.totalorder %s3960_s16, %s3960_s16 }
  0xab   : > { %p3963_p4 = pnand %p3961_p2, %p5065_p3  ;;  %p3970_p9 = por %p3969_p7, %p3968_p0 }
  0xad   : > { %p3964_p12 = pneg %p3963_p4 }
  0xaf   : > { %p3971_p6 = pnand %p3970_p9, %p3964_p12 }
  0xb1   : > { %3974 = shalt.err (!%p3971_p6)
}
  0xb2   : > { %3667 = dma.hbm_to_vmem [thread:$0]  (!%p5066_p1), %s5002_s9, 768, %s4428_s1, [#allocation12], %s5068_s20, %s5068_s20, %s5067_s23  }
  0xb3   : > { %s4154_s17 = smov [#allocation14]   ;;  %s3975_s11 = scalar_lea.hbm %s5005_s12, 48 }
  0xb4   : > { %s477_s3 = sshll.u32 %s4154_s17, 4  ;;  %p3976_p11 = scmp.ne.s32.totalorder %s5005_s12, %s3975_s11  ;;  %s478_s3 = int_to_ptr.vmem [resolvable:$true] %s477_s3 }
  0xb5   : > { %p3982_p10 = scmp.lt.u32.totalorder %s3975_s11, %s5005_s12 }
  0xb6   : > { %p3978_p8 = pnand %p3976_p11, %p5065_p3 }
  0xb8   : > { %p3979_p5 = pneg %p3978_p8 }
  0xba   : > { %p3984_p2 = pnand %p3982_p10, %p3979_p5 }
  0xbc   : > { %3987 = shalt.err (!%p3984_p2)
}
  0xbd   : > { %s3988_s1 = scalar_lea.vmem %s478_s3, 48  ;;  %s3995_s23 = scalar_lea.vmem %s478_s3, 64 }
  0xbe   : > { %p3989_p4 = scmp.ne.s32.totalorder %s478_s3, %s3988_s1  ;;  %p3996_p7 = scmp.lt.s32.totalorder %s478_s3, %s478_s3 }
  0xbf   : > { %p3997_p9 = scmp.lt.s32.totalorder %s3995_s23, %s3988_s1 }
  0xc0   : > { %p3991_p12 = pnand %p3989_p4, %p5065_p3 }
  0xc1   : > { %p3998_p6 = por %p3997_p9, %p3996_p7 }
  0xc2   : > { %p3992_p0 = pneg %p3991_p12 }
  0xc4   : > { %p3999_p13 = pnand %p3998_p6, %p3992_p0 }
  0xc6   : > { %4002 = shalt.err (!%p3999_p13)
}
  0xc7   : > { %s4155_s20 = smov 16   ;;  %s4156_s4 = smov 1  }
  0xc8   : > { %3670 = dma.hbm_to_vmem [thread:$0]  (!%p5066_p1), %s5005_s12, 48, %s478_s3, [#allocation15], %s4155_s20, %s4155_s20, %s4156_s4  }
  0xc9   : > { %s3189_s15 = sshll.u32 %s4374_s27, 3  ;;  %s3190_s17 = sshll.u32 %s4145_s21, 7 }
  0xca   : > { %s4500_s11 = scalar_lea.hbm %s4993_s0, %s3190_s17  ;;  %s501_s5 = scalar_lea.vmem [#allocation2], %s3189_s15 }
  0xcb   : > { %s508_s30 = sshll.u32 %s501_s5, 4  ;;  %s3193_s28 = sshll.u32 %s4145_s21, 4  ;;  %s4502_s30 = int_to_ptr.vmem [resolvable:$true] %s508_s30 }
  0xcc   : > { %s498_s16 = scalar_lea.sflag [#allocation3], %s4374_s27  ;;  %s4003_s1 = scalar_lea.hbm %s4500_s11, 128 }
  0xcd   : > { %p4004_p13 = scmp.ne.s32.totalorder %s4500_s11, %s4003_s1  ;;  %p5069_p3 = scmp.ne.s32.totalorder %s5063_s13, 0 }
  0xce   : > { %s4008_s20 = scalar_lea.hbm %s4993_s0, 256  ;;  %p4009_p8 = scmp.lt.u32.totalorder %s4500_s11, %s4993_s0 }
  0xcf   : > { %p4006_p1 = pnand %p4004_p13, %p5069_p3  ;;  %p4010_p5 = scmp.lt.u32.totalorder %s4008_s20, %s4003_s1 }
  0xd0   : > { %p4012_p2 = scmp.lt.u32.totalorder %s4003_s1, %s4500_s11 }
  0xd1   : > { %p4007_p11 = pneg %p4006_p1  ;;  %p4011_p10 = por %p4010_p5, %p4009_p8 }
  0xd3   : > { %p4013_p4 = por %p4012_p2, %p4011_p10 }
  0xd5   : > { %p4014_p12 = pnand %p4013_p4, %p4007_p11 }
  0xd7   : > { %4017 = shalt.err (!%p4014_p12)
}
  0xd8   : > { %s4018_s18 = scalar_lea.vmem %s4502_s30, 128  ;;  %s4157_s15 = smov [#allocation2]  }
  0xd9   : > { %p4019_p0 = scmp.ne.s32.totalorder %s4502_s30, %s4018_s18  ;;  %s4023_s17 = sshll.u32 %s4157_s15, 4  ;;  %s4024_s17 = int_to_ptr.vmem [resolvable:$false] %s4023_s17 }
  0xda   : > { %s4025_s14 = scalar_lea.vmem %s4024_s17, 256  ;;  %p4026_p6 = scmp.lt.s32.totalorder %s4502_s30, %s4024_s17 }
  0xdb   : > { %p4021_p7 = pnand %p4019_p0, %p5069_p3  ;;  %p4027_p13 = scmp.lt.s32.totalorder %s4025_s14, %s4018_s18 }
  0xdd   : > { %p4022_p9 = pneg %p4021_p7  ;;  %p4028_p1 = por %p4027_p13, %p4026_p6 }
  0xdf   : > { %p4029_p8 = pnand %p4028_p1, %p4022_p9 }
  0xe1   : > { %4032 = shalt.err (!%p4029_p8)
}
  0xe2   : > { %p5070_p11 = scmp.ne.s32.totalorder %s5061_s8, 0  ;;  %s4532_s1 = scalar_lea.hbm %s4995_s2, %s3193_s28 }
  0xe3   : > { %s536_s3 = scalar_lea.vmem [#allocation7], %s4374_s27  ;;  %s4033_s20 = scalar_lea.hbm %s4532_s1, 16 }
  0xe4   : > { %3674 = dma.hbm_to_vmem [thread:$0]  (!%p5070_p11), %s4500_s11, 128, %s4502_s30, %s498_s16  }
  0xe5   : > { %s543_s23 = sshll.u32 %s536_s3, 4  ;;  %p4034_p5 = scmp.ne.s32.totalorder %s4532_s1, %s4033_s20  ;;  %s544_s23 = int_to_ptr.vmem [resolvable:$true] %s543_s23 }
  0xe6   : > { %s4038_s30 = scalar_lea.hbm %s4995_s2, 32  ;;  %p4039_p4 = scmp.lt.u32.totalorder %s4532_s1, %s4995_s2 }
  0xe7   : > { %p4036_p10 = pnand %p4034_p5, %p5069_p3  ;;  %p4040_p12 = scmp.lt.u32.totalorder %s4038_s30, %s4033_s20 }
  0xe8   : > { %p4042_p7 = scmp.lt.u32.totalorder %s4033_s20, %s4532_s1 }
  0xe9   : > { %p4037_p2 = pneg %p4036_p10  ;;  %p4041_p0 = por %p4040_p12, %p4039_p4 }
  0xeb   : > { %p4043_p9 = por %p4042_p7, %p4041_p0 }
  0xed   : > { %p4044_p6 = pnand %p4043_p9, %p4037_p2 }
  0xef   : > { %4047 = shalt.err (!%p4044_p6)
}
  0xf0   : > { %s4048_s27 = scalar_lea.vmem %s544_s23, 16  ;;  %s4158_s28 = smov [#allocation7]  }
  0xf1   : > { %p4049_p13 = scmp.ne.s32.totalorder %s544_s23, %s4048_s27  ;;  %s4053_s18 = sshll.u32 %s4158_s28, 4  ;;  %s4054_s18 = int_to_ptr.vmem [resolvable:$false] %s4053_s18 }
  0xf2   : > { %s4055_s15 = scalar_lea.vmem %s4054_s18, 32  ;;  %p4056_p5 = scmp.lt.s32.totalorder %s544_s23, %s4054_s18 }
  0xf3   : > { %p4051_p1 = pnand %p4049_p13, %p5069_p3  ;;  %p4057_p10 = scmp.lt.s32.totalorder %s4055_s15, %s4048_s27 }
  0xf5   : > { %p4052_p8 = pneg %p4051_p1  ;;  %p4058_p11 = por %p4057_p10, %p4056_p5 }
  0xf7   : > { %p4059_p4 = pnand %p4058_p11, %p4052_p8 }
  0xf9   : > { %4062 = shalt.err (!%p4059_p4)
}
  0xfa   : > { %p5071_p12 = scmp.ne.s32.totalorder %s5061_s8, 0  ;;  %p5072_p2 = scmp.ne.s32.totalorder %s5049_s25, 0 }
  0xfb   : > { %s4556_s13 = sand.u32 (!%p5072_p2), 1, %s4137_s19   ;;  %p5073_p3 = scmp.ne.s32.totalorder (!%p5072_p2), %s5056_s26, 0 }
  0xfc   : > { %3680 = dma.hbm_to_vmem [thread:$0]  (!%p5071_p12), %s4532_s1, 16, %s544_s23, %s4398_s22  }
  0xfd   : > { %552 = sbr.rel (%p5072_p2) target bundleno = 5738 (0x166a), region = 80  ;;  %s3195_s17 = sshll.u32 (!%p5072_p2), %s4556_s13, 3 }
  0xfe   : > { %s555_s14 = scalar_lea.sflag (!%p5072_p2), [#allocation3], %s4556_s13  ;;  %s4560_s10 = scalar_lea.vmem (!%p5072_p2), [#allocation2], %s3195_s17 }
 0x104   : > { %4108 = dma.done.wait (%p5073_p3), %s555_s14, 128  }
 0x105   : > { %4110 = vsyncadd (%p5073_p3), %s555_s14, 4294967168  ;;  %s563_s25 = sand.u32 1, %s4270_s24   ;;  %s3196_s22 = sshll.u32 %s4556_s13, 2 }
 0x106   : > { %s564_s8 = scalar_lea.sflag [#allocation6], %s563_s25  ;;  %s4568_s5 = scalar_lea.vmem [#allocation5], %s3196_s22 }
 0x107   : > { %4112 = dma.done.wait (%p5073_p3), %s564_s8, 80  }
 0x108   : > { %4114 = vsyncadd (%p5073_p3), %s564_s8, 4294967216  ;;  %s575_s1 = scalar_lea.vmem [#allocation7], %s4556_s13  ;;  %p5074_p11 = scmp.eq.s32.totalorder %s4270_s24, 0 }
 0x10a   : > { %4116 = dma.done.wait (%p5074_p11), [#allocation9], 1536   ;;  %p5075_p0 = pmov %p5074_p11 }
 0x10c   : > { %4118 = vsyncadd (%p5075_p0), [#allocation9], 4294965760  ;;  %p5076_p7 = pmov %p5075_p0 }
 0x10d   : > { %p5077_p9 = pmov %p5075_p0 }
 0x10e   : > { %4120 = dma.done.wait (%p5076_p7), [#allocation12], 1536  }
 0x10f   : > { %4122 = vsyncadd (%p5077_p9), [#allocation12], 4294965760  ;;  %p5078_p6 = pmov %p5075_p0 }
 0x110   : > { %p5079_p13 = pmov %p5075_p0 }
 0x111   : > { %4124 = dma.done.wait (%p5078_p6), [#allocation15], 48  }
 0x112   : > { %4126 = vsyncadd (%p5079_p13), [#allocation15], 4294967248  ;;  %v4159_v0 = vmov 0.0   ;;  %vm4160_vm0 = vmmov 0   ;;  %v3747_v1 = vld [vmem:[#allocation10] sm:$0xff]   ;;  %v3748_v2 = vld [vmem:[#allocation8] sm:$0xff]  }
 0x113   : > { %3395 = vmatprep.subr.bf16.mxu1 %v4159_v0  ;;  %3387 = vmatprep.subr.bf16.mxu0 %v4159_v0  ;;  %v3749_v3 = vld [vmem:[#allocation10 + $0x8] sm:$0xff]   ;;  %vm679_vm1 = vcmask 261120   ;;  %v3750_v5 = vld [vmem:[#allocation8 + $0x8] sm:$0xff]   ;;  %v3207_v8 = vld [vmem:[%s5000_s7] ss:$0 sm:$0xff]  ;;  %vm861_vm2 = vcmask 64512  }
 0x114   : > { %3399 = vmatprep.mubr.msk.bf16.mxu1 %vm4160_vm0, %v4159_v0  ;;  %3391 = vmatprep.mubr.msk.bf16.mxu0 %vm4160_vm0, %v4159_v0  ;;  %v4596_v4 = vld [vmem:[%s4568_s5] sm:$0xf]  ;;  %v4599_v6 = vld [vmem:[%s4560_s10] sm:$0xff]  ;;  %s4161_s4 = smov 112   ;;  %s4162_s11 = smov 120   ;;  %vm923_vm3 = vcmask 1043456  }
 0x115   : > { %3396 = vmatpush3.bf16.msra.mxu1 %v3747_v1  ;;  %3388 = vmatpush3.bf16.msra.mxu0 %v3748_v2  ;;  %v655_v7 = vpack.c.bf16 %v4599_v6, %v4599_v6  ;;  %v3203_v9 = vld [vmem:[%s4999_s6] ss:$0 sm:$0xff]  ;;  %s4163_s30 = smov 104   ;;  %v3752_v24 = vld [vmem:[#allocation11 + $0x8] sm:$0xff]   ;;  %s5080_s27 = sld [smem:[#allocation33_spill]]  ;;  %vm1313_vm4 = vcmask 130048  }
 0x116   : > { %3397 = vmatprep.subr.bf16.mxu1 %v4159_v0  ;;  %3389 = vmatprep.subr.bf16.mxu0 %v4159_v0  ;;  %v3751_v23 = vld [vmem:[#allocation11] sm:$0xff]   ;;  %s4164_s28 = smov 8   ;;  %s4165_s18 = smov 16   ;;  %vm1315_vm5 = vcmask 195584  }
 0x117   : > { %v4652_v34 = vld [vmem:[%s575_s1] ss:$0 sm:$0xff]  ;;  %s4166_s15 = smov 24   ;;  %s5081_s10 = sld [smem:[#allocation34_spill]] }
 0x118   : > { %s5082_s8 = sld [smem:[#allocation35_spill]]  ;;  %s3202_s26 = sshll.u32 %s4556_s13, 4 }
 0x119   : > { %3398 = vmatpush3.bf16.msra.mxu1 %v3749_v3  ;;  %3390 = vmatpush3.bf16.msra.mxu0 %v3750_v5  ;;  %s5084_s20 = sld [smem:[#allocation37_spill]]  ;;  %s3302_s16 = sshll.u32 %s4270_s24, 8 }
 0x11a   : > { %3411 = vmatprep.subr.bf16.mxu1 %v4159_v0  ;;  %3403 = vmatprep.subr.bf16.mxu0 %v4159_v0  ;;  %s3009_s24 = scalar_lea.sflag [#allocation4], %s4556_s13  ;;  %s4168_s14 = smov [#allocation16]  }
 0x11b   : > { %v3211_v41 = vld [vmem:[%s5080_s27] ss:$0 sm:$0xff]  ;;  %s4067_s25 = sshll.u32 %s4168_s14, 4  ;;  %s4068_s25 = int_to_ptr.vmem [resolvable:$false] %s4067_s25 }
 0x11c   : > { %3400 = vmatmul.mubr.msk.bf16.vlgmr.msra.gmra.mrb[0].mxu1 %vm679_vm1, %v4596_v4  ;;  %3392 = vmatmul.mubr.msk.bf16.vlgmr.msra.gmra.mrb[0].mxu0 %vm679_vm1, %v655_v7 }
 0x11d   : > { %3413 = vmatprep.mubr.msk.bf16.mxu1 %vm4160_vm0, %v4159_v0  ;;  %3407 = vmatprep.mubr.msk.bf16.mxu0 %vm4160_vm0, %v4159_v0 }
 0x11e   : > { %3404 = vmatpush3.bf16.msra.mxu0 %v3751_v23 }
 0x11f   : > { %3405 = vmatprep.subr.bf16.mxu0 %v4159_v0 }
 0x122   : > { %3406 = vmatpush3.bf16.msra.mxu0 %v3752_v24 }
 0x123   : > { %3417 = vmatprep.subr.bf16.mxu0 %v4159_v0 }
 0x125   : > { %3408 = vmatmul.mubr.msk.bf16.vlgmr.msra.gmra.mrb[4].mxu0 %vm679_vm1, %v4596_v4 }
 0x126   : > { %3419 = vmatprep.mubr.msk.bf16.mxu0 %vm4160_vm0, %v4159_v0 }
 0x1ef   : > { %v783_v10 = vpop.f32.mrb[0].mxu1  ;;  %v717_v13 = vpop.f32.mrb[0].mxu0 }
 0x1f0   : > { %v784_v11 = vadd.f32 %v3207_v8, %v783_v10  ;;  %v3401_v12 = vpop.f32.mrb[1].mxu1  ;;  %v718_v15 = vadd.f32 %v3203_v9, %v717_v13  ;;  %v3393_v16 = vpop.f32.mrb[1].mxu0 }
 0x1f1   : > { %v786_v14 = vpop.f32.mrb[2].mxu1  ;;  %v720_v19 = vpop.f32.mrb[2].mxu0 }
 0x1f2   : > { %v853_v17 = vpack.c.bf16 %v784_v11, %v784_v11  ;;  %v3402_v18 = vpop.f32.mrb[3].mxu1  ;;  %v3394_v20 = vpop.f32.mrb[3].mxu0  ;;  %v852_v21 = vpack.c.bf16 %v718_v15, %v718_v15 }
 0x1f4   : > { %1082 = vrot.lane.b32.xlu1 %v853_v17, %s4161_s4  ;;  %971 = vrot.lane.b32.xlu0 %v853_v17, %s4162_s11  ;;  %v866_v22 = vsel %vm861_vm2, %v853_v17, 0 }
 0x1f5   : > { %3412 = vmatpush3.bf16.xpose.msra.mxu1 %v866_v22 }
 0x1f6   : > { %3423 = vmatprep.subr.bf16.mxu1 %v4159_v0 }
 0x1f8   : > { %1080 = vrot.lane.b32.xlu1 %v852_v21, %s4161_s4  ;;  %968 = vrot.lane.b32.xlu0 %v852_v21, %s4162_s11  ;;  %v846_v42 = vpop.f32.mrb[4].mxu0 }
 0x1f9   : > { %v847_v43 = vadd.f32 %v3211_v41, %v846_v42  ;;  %v3409_v44 = vpop.f32.mrb[5].mxu0 }
 0x1fa   : > { %v849_v45 = vpop.f32.mrb[6].mxu0 }
 0x1fb   : > { %v854_v46 = vpack.c.bf16 %v847_v43, %v847_v43  ;;  %v3410_v47 = vpop.f32.mrb[7].mxu0 }
 0x1fc   : > { %1190 = vrot.lane.b32.xlu1 %v852_v21, %s4163_s30  ;;  %1192 = vrot.lane.b32.xlu0 %v853_v17, %s4163_s30 }
 0x1fd   : > { %3414 = vmatmul.mubr.msk.bf16.vlgmr.msra.gmra.mrb[4].mxu1 %vm861_vm2, %v852_v21  ;;  %v925_v48 = vsel %vm923_vm3, %v854_v46, 0 }
 0x1fe   : > { %3425 = vmatprep.mubr.msk.bf16.mxu1 %vm4160_vm0, %v4159_v0  ;;  %3418 = vmatpush3.bf16.msra.mxu0 %v925_v48 }
 0x1ff   : > { %3429 = vmatprep.subr.bf16.mxu0 %v4159_v0 }
 0x266   : > { %v972_v25 = vpop.permute.xlu0 %971  ;;  %v1083_v27 = vpop.permute.xlu1 %1082 }
 0x267   : > { %v977_v26 = vsel %vm861_vm2, %v972_v25, 0  ;;  %v1088_v29 = vsel %vm861_vm2, %v1083_v27, 0 }
 0x268   : > { %3424 = vmatpush3.bf16.xpose.msra.mxu1 %v977_v26 }
 0x269   : > { %3435 = vmatprep.subr.bf16.mxu1 %v4159_v0 }
 0x26a   : > { %v969_v28 = vpop.permute.xlu0 %968  ;;  %v1081_v31 = vpop.permute.xlu1 %1080 }
 0x26e   : > { %v1193_v30 = vpop.permute.xlu0 %1192  ;;  %v1191_v33 = vpop.permute.xlu1 %1190 }
 0x26f   : > { %3426 = vmatmul.mubr.msk.bf16.vlgmr.msra.gmra.mrb[8].mxu1 %vm861_vm2, %v969_v28  ;;  %v1198_v32 = vsel %vm861_vm2, %v1193_v30, 0 }
 0x270   : > { %3436 = vmatpush3.bf16.xpose.msra.mxu1 %v1088_v29  ;;  %3437 = vmatprep.mubr.msk.bf16.mxu1 %vm4160_vm0, %v4159_v0 }
 0x271   : > { %3447 = vmatprep.subr.bf16.mxu1 %v4159_v0 }
 0x277   : > { %3438 = vmatmul.mubr.msk.bf16.vlgmr.msra.gmra.mrb[12].mxu1 %vm861_vm2, %v1081_v31 }
 0x278   : > { %3448 = vmatpush3.bf16.xpose.msra.mxu1 %v1198_v32  ;;  %3449 = vmatprep.mubr.msk.bf16.mxu1 %vm4160_vm0, %v4159_v0 }
 0x279   : > { %3459 = vmatprep.subr.bf16.mxu1 %v4159_v0 }
 0x27f   : > { %3450 = vmatmul.mubr.msk.bf16.vlgmr.msra.gmra.mrb[16].mxu1 %vm861_vm2, %v1191_v33 }
 0x280   : > { %3463 = vmatprep.mubr.msk.bf16.mxu1 %vm4160_vm0, %v4159_v0 }
 0x2d0   : > { %v902_v35 = vpop.f32.mrb[4].mxu1 }
 0x2d1   : > { %v903_v36 = vadd.f32 %v4652_v34, %v902_v35  ;;  %v3415_v37 = vpop.f32.mrb[5].mxu1 }
 0x2d2   : > { %v905_v38 = vpop.f32.mrb[6].mxu1 }
 0x2d3   : > { %v3416_v39 = vpop.f32.mrb[7].mxu1  ;;  %v908_v40 = vsel %vm861_vm2, %v903_v36, -inf }
 0x2d4   : > { %909 = vmax.xlane.f32.xlu0 %v908_v40 }
 0x342   : > { %v1013_v49 = vpop.f32.mrb[8].mxu1 }
 0x343   : > { %v1014_v50 = vadd.f32 %v4652_v34, %v1013_v49  ;;  %v3427_v51 = vpop.f32.mrb[9].mxu1 }
 0x344   : > { %v1016_v52 = vpop.f32.mrb[10].mxu1 }
 0x345   : > { %v3428_v53 = vpop.f32.mrb[11].mxu1  ;;  %v1019_v54 = vsel %vm861_vm2, %v1014_v50, -inf }
 0x346   : > { %1020 = vmax.xlane.f32.xlu1 %v1019_v54  ;;  %v3753_v53 = vld [vmem:[#allocation13] sm:$0xff]  }
 0x347   : > { %3460 = vmatpush3.bf16.msra.mxu1 %v3753_v53 }
 0x348   : > { %3461 = vmatprep.subr.bf16.mxu1 %v4159_v0 }
 0x34a   : > { %v1124_v55 = vpop.f32.mrb[12].mxu1 }
 0x34b   : > { %v1125_v56 = vadd.f32 %v4652_v34, %v1124_v55  ;;  %v3439_v57 = vpop.f32.mrb[13].mxu1 }
 0x34c   : > { %v1127_v58 = vpop.f32.mrb[14].mxu1 }
 0x34d   : > { %v3440_v59 = vpop.f32.mrb[15].mxu1  ;;  %v1130_v60 = vsel %vm861_vm2, %v1125_v56, -inf  ;;  %v3754_v58 = vld [vmem:[#allocation13 + $0x8] sm:$0xff]  }
 0x34e   : > { %1131 = vmax.xlane.f32.xlu0 %v1130_v60  ;;  %3462 = vmatpush3.bf16.msra.mxu1 %v3754_v58  ;;  %v3760_v58 = vld [vmem:[#allocation11 + $0x18] sm:$0xff]  }
 0x34f   : > { %3475 = vmatprep.subr.bf16.mxu1 %v4159_v0 }
 0x352   : > { %v1234_v61 = vpop.f32.mrb[16].mxu1 }
 0x353   : > { %v1235_v62 = vadd.f32 %v4652_v34, %v1234_v61  ;;  %v3451_v63 = vpop.f32.mrb[17].mxu1 }
 0x354   : > { %v1237_v1 = vpop.f32.mrb[18].mxu1 }
 0x355   : > { %v3452_v2 = vpop.f32.mrb[19].mxu1  ;;  %v1240_v3 = vsel %vm861_vm2, %v1235_v62, -inf }
 0x356   : > { %1241 = vmax.xlane.f32.xlu0 %v1240_v3 }
 0x361   : > { %v910_v5 = vpop.xlane.xlu0 %909 }
 0x362   : > { %v911_v7 = vsub.f32 %v903_v36, %v910_v5 }
 0x364   : > { %v912_v8 = vmul.f32 1.442695, %v911_v7 }
 0x366   : > { %3777 = vpow2.f32 %v912_v8 }
 0x370   : > { %v3778_v9 = vpop.eup %3777 }
 0x371   : > { %v914_v10 = vsel %vm861_vm2, %v3778_v9, 0.0 }
 0x372   : > { %915 = vadd.xlane.f32.xlu1 %v914_v10 }
 0x383   : > { %1032 = vrot.lane.b32.xlu1 %v854_v46, %s4162_s11 }
 0x3d3   : > { %v1021_v11 = vpop.xlane.xlu1 %1020 }
 0x3d4   : > { %v1022_v12 = vsub.f32 %v1014_v50, %v1021_v11 }
 0x3d6   : > { %v1023_v13 = vmul.f32 1.442695, %v1022_v12 }
 0x3d8   : > { %3779 = vpow2.f32 %v1023_v13  ;;  %v3224_v13 = vld [vmem:[%s5081_s10] ss:$0 sm:$0xff] }
 0x3db   : > { %v1132_v14 = vpop.xlane.xlu0 %1131 }
 0x3dc   : > { %v1133_v15 = vsub.f32 %v1125_v56, %v1132_v14 }
 0x3de   : > { %v1134_v16 = vmul.f32 1.442695, %v1133_v15 }
 0x3e0   : > { %3781 = vpow2.f32 %v1134_v16 }
 0x3e2   : > { %v3780_v17 = vpop.eup %3779 }
 0x3e3   : > { %v1242_v18 = vpop.xlane.xlu0 %1241  ;;  %v1025_v19 = vsel %vm861_vm2, %v3780_v17, 0.0 }
 0x3e4   : > { %v1243_v20 = vsub.f32 %v1235_v62, %v1242_v18  ;;  %1026 = vadd.xlane.f32.xlu0 %v1025_v19 }
 0x3e6   : > { %v1244_v21 = vmul.f32 1.442695, %v1243_v20 }
 0x3e8   : > { %3783 = vpow2.f32 %v1244_v21 }
 0x3ea   : > { %v3782_v22 = vpop.eup %3781 }
 0x3eb   : > { %v1136_v23 = vsel %vm861_vm2, %v3782_v22, 0.0 }
 0x3ec   : > { %1137 = vadd.xlane.f32.xlu1 %v1136_v23 }
 0x3f2   : > { %v3784_v24 = vpop.eup %3783 }
 0x3f3   : > { %v1246_v25 = vsel %vm861_vm2, %v3784_v24, 0.0 }
 0x3f4   : > { %1247 = vadd.xlane.f32.xlu0 %v1246_v25 }
 0x3fd   : > { %1252 = vrot.lane.b32.xlu1 %v854_v46, %s4163_s30 }
 0x3ff   : > { %v916_v26 = vpop.xlane.xlu1 %915 }
 0x400   : > { %3785 = vrcp.f32 %v916_v26  ;;  %v3755_v26 = vld [vmem:[#allocation10 + $0x10] sm:$0xff]  }
 0x403   : > { %v1033_v28 = vpop.permute.xlu1 %1032 }
 0x404   : > { %v1038_v31 = vsel %vm923_vm3, %v1033_v28, 0  ;;  %v3758_v28 = vld [vmem:[#allocation8 + $0x18] sm:$0xff]  }
 0x40a   : > { %v3786_v27 = vpop.eup %3785  ;;  %1142 = vrot.lane.b32.xlu0 %v854_v46, %s4161_s4 }
 0x40b   : > { %v918_v29 = vmul.f32 %v3786_v27, %v3778_v9  ;;  %v3756_v27 = vld [vmem:[#allocation10 + $0x18] sm:$0xff]  }
 0x40d   : > { %v919_v30 = vpack.c.bf16 %v918_v29, %v918_v29 }
 0x40f   : > { %3420 = vmatmul.mubr.msk.bf16.vlgmr.msra.gmra.mrb[8].mxu0 %vm861_vm2, %v919_v30 }
 0x410   : > { %3430 = vmatpush3.bf16.msra.mxu0 %v1038_v31  ;;  %3431 = vmatprep.mubr.msk.bf16.mxu0 %vm4160_vm0, %v4159_v0 }
 0x411   : > { %3441 = vmatprep.subr.bf16.mxu0 %v4159_v0 }
 0x471   : > { %v1027_v32 = vpop.xlane.xlu0 %1026 }
 0x472   : > { %3787 = vrcp.f32 %v1027_v32 }
 0x479   : > { %v1138_v33 = vpop.xlane.xlu1 %1137 }
 0x47a   : > { %3789 = vrcp.f32 %v1138_v33  ;;  %v3228_v33 = vld [vmem:[%s5082_s8] ss:$0 sm:$0xff] }
 0x47c   : > { %v3788_v35 = vpop.eup %3787 }
 0x47d   : > { %v1029_v36 = vmul.f32 %v3788_v35, %v3780_v17  ;;  %v1253_v43 = vpop.permute.xlu1 %1252 }
 0x47e   : > { %v1258_v45 = vsel %vm923_vm3, %v1253_v43, 0 }
 0x47f   : > { %v1030_v37 = vpack.c.bf16 %v1029_v36, %v1029_v36  ;;  %v3229_v36 = vld [vmem:[#allocation14] ss:$0 sm:$0xff] }
 0x481   : > { %v1248_v38 = vpop.xlane.xlu0 %1247  ;;  %3432 = vmatmul.mubr.msk.bf16.vlgmr.msra.gmra.mrb[12].mxu0 %vm861_vm2, %v1030_v37 }
 0x482   : > { %3791 = vrcp.f32 %v1248_v38  ;;  %3443 = vmatprep.mubr.msk.bf16.mxu0 %vm4160_vm0, %v4159_v0 }
 0x484   : > { %v3790_v39 = vpop.eup %3789 }
 0x485   : > { %v1140_v40 = vmul.f32 %v3790_v39, %v3782_v22  ;;  %v1143_v41 = vpop.permute.xlu0 %1142 }
 0x486   : > { %v1148_v42 = vsel %vm923_vm3, %v1143_v41, 0 }
 0x487   : > { %3442 = vmatpush3.bf16.msra.mxu0 %v1148_v42  ;;  %v1141_v44 = vpack.c.bf16 %v1140_v40, %v1140_v40  ;;  %v3236_v40 = vld [vmem:[%s5000_s7 + $0x1] ss:$0 sm:$0xff] }
 0x488   : > { %3453 = vmatprep.subr.bf16.mxu0 %v4159_v0 }
 0x48a   : > { %3444 = vmatmul.mubr.msk.bf16.vlgmr.msra.gmra.mrb[16].mxu0 %vm861_vm2, %v1141_v44 }
 0x48b   : > { %3454 = vmatpush3.bf16.msra.mxu0 %v1258_v45  ;;  %3455 = vmatprep.mubr.msk.bf16.mxu0 %vm4160_vm0, %v4159_v0 }
 0x48c   : > { %v3792_v46 = vpop.eup %3791  ;;  %3467 = vmatprep.subr.bf16.mxu0 %v4159_v0 }
 0x48d   : > { %v1250_v47 = vmul.f32 %v3792_v46, %v3784_v24 }
 0x48f   : > { %v1251_v48 = vpack.c.bf16 %v1250_v47, %v1250_v47 }
 0x492   : > { %3456 = vmatmul.mubr.msk.bf16.vlgmr.msra.gmra.mrb[20].mxu0 %vm861_vm2, %v1251_v48  ;;  %v3231_v48 = vld [vmem:[%s4999_s6 + $0x1] ss:$0 sm:$0xff] }
 0x493   : > { %3471 = vmatprep.mubr.msk.bf16.mxu0 %vm4160_vm0, %v4159_v0 }
 0x4e2   : > { %v961_v49 = vpop.f32.mrb[8].mxu0 }
 0x4e3   : > { %v3421_v50 = vpop.f32.mrb[9].mxu0 }
 0x4e4   : > { %v964_v51 = vpop.f32.mrb[10].mxu0 }
 0x4e5   : > { %v3422_v52 = vpop.f32.mrb[11].mxu0 }
 0x554   : > { %v1074_v54 = vpop.f32.mrb[12].mxu0 }
 0x555   : > { %1301 = vrot.lane.b32.xlu1 %v1074_v54, %s4164_s28  ;;  %v3433_v55 = vpop.f32.mrb[13].mxu0 }
 0x556   : > { %v1077_v56 = vpop.f32.mrb[14].mxu0 }
 0x557   : > { %v3434_v57 = vpop.f32.mrb[15].mxu0 }
 0x558   : > { %v3759_v57 = vld [vmem:[#allocation11 + $0x10] sm:$0xff]  }
 0x55d   : > { %v1184_v59 = vpop.f32.mrb[16].mxu0 }
 0x55e   : > { %1305 = vrot.lane.b32.xlu0 %v1184_v59, %s4165_s18  ;;  %v3445_v60 = vpop.f32.mrb[17].mxu0 }
 0x55f   : > { %v1187_v61 = vpop.f32.mrb[18].mxu0 }
 0x560   : > { %v3446_v62 = vpop.f32.mrb[19].mxu0 }
 0x565   : > { %v1294_v63 = vpop.f32.mrb[20].mxu0 }
 0x566   : > { %1309 = vrot.lane.b32.xlu1 %v1294_v63, %s4166_s15  ;;  %v3457_v1 = vpop.f32.mrb[21].mxu0 }
 0x567   : > { %v1297_v2 = vpop.f32.mrb[22].mxu0 }
 0x568   : > { %v3458_v3 = vpop.f32.mrb[23].mxu0 }
 0x5c7   : > { %v1302_v5 = vpop.permute.xlu1 %1301 }
 0x5c8   : > { %v1312_v8 = vsel %vm861_vm2, %v961_v49, %v1302_v5 }
 0x5d0   : > { %v1306_v7 = vpop.permute.xlu0 %1305 }
 0x5d1   : > { %v1314_v9 = vsel %vm1313_vm4, %v1312_v8, %v1306_v7 }
 0x5d8   : > { %v1310_v10 = vpop.permute.xlu1 %1309 }
 0x5d9   : > { %v1316_v11 = vsel %vm1315_vm5, %v1314_v9, %v1310_v10  ;;  %v3241_v10 = vld [vmem:[%s5080_s27 + $0x1] ss:$0 sm:$0xff] }
 0x5da   : > { %v1317_v12 = vpack.c.bf16 %v1316_v11, %v1316_v11 }
 0x5dc   : > { %3464 = vmatmul.mubr.msk.bf16.vlgmr.msra.gmra.mrb[20].mxu1 %vm679_vm1, %v1317_v12 }
 0x5dd   : > { %3479 = vmatprep.mubr.msk.bf16.mxu1 %vm4160_vm0, %v4159_v0  ;;  %3476 = vmatpush3.bf16.msra.mxu1 %v3755_v26 }
 0x5de   : > { %3477 = vmatprep.subr.bf16.mxu1 %v4159_v0 }
 0x5e1   : > { %3478 = vmatpush3.bf16.msra.mxu1 %v3756_v27 }
 0x5e2   : > { %3491 = vmatprep.subr.bf16.mxu1 %v4159_v0 }
 0x5e4   : > { %3480 = vmatmul.mubr.msk.bf16.vlgmr.msra.gmra.mrb[24].mxu1 %vm679_vm1, %v4596_v4 }
 0x5e5   : > { %3493 = vmatprep.mubr.msk.bf16.mxu1 %vm4160_vm0, %v4159_v0 }
 0x6af   : > { %v1378_v14 = vpop.f32.mrb[20].mxu1 }
 0x6b0   : > { %v1379_v15 = vadd.f32 %v3224_v13, %v1378_v14  ;;  %v3465_v16 = vpop.f32.mrb[21].mxu1 }
 0x6b1   : > { %v1381_v17 = vpop.f32.mrb[22].mxu1 }
 0x6b2   : > { %v3466_v18 = vpop.f32.mrb[23].mxu1  ;;  %v1384_v19 = vadd.f32 %v1379_v15, %v4599_v6  ;;  %v3757_v6 = vld [vmem:[#allocation8 + $0x10] sm:$0xff]  }
 0x6b3   : > { %3468 = vmatpush3.bf16.msra.mxu0 %v3757_v6 }
 0x6b4   : > { %v1385_v20 = vsel %vm679_vm1, %v1384_v19, 0.0  ;;  %3469 = vmatprep.subr.bf16.mxu0 %v4159_v0 }
 0x6b5   : > { %1386 = vadd.xlane.f32.xlu0 %v1385_v20 }
 0x6b7   : > { %3470 = vmatpush3.bf16.msra.mxu0 %v3758_v28  ;;  %v1543_v41 = vpop.f32.mrb[24].mxu1 }
 0x6b8   : > { %3483 = vmatprep.subr.bf16.mxu0 %v4159_v0  ;;  %v1544_v42 = vadd.f32 %v3236_v40, %v1543_v41  ;;  %v3481_v43 = vpop.f32.mrb[25].mxu1 }
 0x6b9   : > { %v1546_v44 = vpop.f32.mrb[26].mxu1 }
 0x6ba   : > { %v1615_v45 = vpack.c.bf16 %v1544_v42, %v1544_v42  ;;  %v3482_v46 = vpop.f32.mrb[27].mxu1 }
 0x6bc   : > { %v1621_v47 = vsel %vm861_vm2, %v1615_v45, 0 }
 0x6bd   : > { %3492 = vmatpush3.bf16.xpose.msra.mxu1 %v1621_v47 }
 0x6be   : > { %3503 = vmatprep.subr.bf16.mxu1 %v4159_v0 }
 0x6cb   : > { %1725 = vrot.lane.b32.xlu0 %v1615_v45, %s4162_s11 }
 0x6cf   : > { %1836 = vrot.lane.b32.xlu0 %v1615_v45, %s4161_s4 }
 0x6d3   : > { %1946 = vrot.lane.b32.xlu0 %v1615_v45, %s4163_s30 }
 0x742   : > { %v1387_v21 = vpop.xlane.xlu0 %1386 }
 0x743   : > { %v1389_v22 = vmul.f32 0.03125, %v1387_v21 }
 0x745   : > { %v1390_v23 = vsub.f32 %v1384_v19, %v1389_v22 }
 0x746   : > { %v1726_v53 = vpop.permute.xlu0 %1725 }
 0x747   : > { %v1391_v24 = vmul.f32 %v1390_v23, %v1390_v23  ;;  %v1731_v56 = vsel %vm861_vm2, %v1726_v53, 0 }
 0x749   : > { %v1392_v25 = vsel %vm679_vm1, %v1391_v24, 0.0 }
 0x74a   : > { %1393 = vadd.xlane.f32.xlu1 %v1392_v25  ;;  %v1837_v59 = vpop.permute.xlu0 %1836 }
 0x74b   : > { %v1842_v61 = vsel %vm861_vm2, %v1837_v59, 0 }
 0x74e   : > { %v1947_v62 = vpop.permute.xlu0 %1946 }
 0x74f   : > { %v1952_v1 = vsel %vm861_vm2, %v1947_v62, 0 }
 0x7d7   : > { %v1394_v29 = vpop.xlane.xlu1 %1393 }
 0x7d8   : > { %v1395_v30 = vmul.f32 0.03125, %v1394_v29 }
 0x7da   : > { %v1396_v31 = vadd.f32 1e-05, %v1395_v30 }
 0x7dc   : > { %3793 = vrsqrt.f32 %v1396_v31 }
 0x7e6   : > { %v3794_v32 = vpop.eup %3793 }
 0x7e7   : > { %v1398_v35 = vmul.f32 %v3794_v32, %v1390_v23 }
 0x7e9   : > { %v1406_v37 = vmul.f32 %v3228_v33, %v1398_v35 }
 0x7eb   : > { %v4720_v38 = vadd.f32 %v3229_v36, %v1406_v37 }
 0x7ed   : > { %v1415_v39 = vpack.c.bf16 %v4720_v38, %v4720_v38 }
 0x7ef   : > { %3472 = vmatmul.mubr.msk.bf16.vlgmr.msra.gmra.mrb[24].mxu0 %vm679_vm1, %v1415_v39 }
 0x7f0   : > { %3487 = vmatprep.mubr.msk.bf16.mxu0 %vm4160_vm0, %v4159_v0  ;;  %3484 = vmatpush3.bf16.msra.mxu0 %v3759_v57 }
 0x7f1   : > { %3485 = vmatprep.subr.bf16.mxu0 %v4159_v0 }
 0x7f4   : > { %3486 = vmatpush3.bf16.msra.mxu0 %v3760_v58 }
 0x7f5   : > { %3497 = vmatprep.subr.bf16.mxu0 %v4159_v0 }
 0x7f7   : > { %3488 = vmatmul.mubr.msk.bf16.vlgmr.msra.gmra.mrb[28].mxu0 %vm679_vm1, %v4596_v4 }
 0x7f8   : > { %3499 = vmatprep.mubr.msk.bf16.mxu0 %vm4160_vm0, %v4159_v0 }
 0x8c2   : > { %v1478_v49 = vpop.f32.mrb[24].mxu0 }
 0x8c3   : > { %v1479_v50 = vadd.f32 %v3231_v48, %v1478_v49  ;;  %v3473_v51 = vpop.f32.mrb[25].mxu0 }
 0x8c4   : > { %v1481_v52 = vpop.f32.mrb[26].mxu0 }
 0x8c5   : > { %v1614_v54 = vpack.c.bf16 %v1479_v50, %v1479_v50  ;;  %v3474_v55 = vpop.f32.mrb[27].mxu0 }
 0x8c7   : > { %1722 = vrot.lane.b32.xlu1 %v1614_v54, %s4162_s11  ;;  %3494 = vmatmul.mubr.msk.bf16.vlgmr.msra.gmra.mrb[28].mxu1 %vm861_vm2, %v1614_v54 }
 0x8c8   : > { %3504 = vmatpush3.bf16.xpose.msra.mxu1 %v1731_v56  ;;  %3505 = vmatprep.mubr.msk.bf16.mxu1 %vm4160_vm0, %v4159_v0 }
 0x8c9   : > { %3515 = vmatprep.subr.bf16.mxu1 %v4159_v0 }
 0x8ca   : > { %v1608_v11 = vpop.f32.mrb[28].mxu0 }
 0x8cb   : > { %1834 = vrot.lane.b32.xlu1 %v1614_v54, %s4161_s4  ;;  %v1609_v12 = vadd.f32 %v3241_v10, %v1608_v11  ;;  %v3489_v13 = vpop.f32.mrb[29].mxu0 }
 0x8cc   : > { %v1611_v14 = vpop.f32.mrb[30].mxu0 }
 0x8cd   : > { %v1616_v15 = vpack.c.bf16 %v1609_v12, %v1609_v12  ;;  %v3490_v16 = vpop.f32.mrb[31].mxu0 }
 0x8cf   : > { %1944 = vrot.lane.b32.xlu1 %v1614_v54, %s4163_s30  ;;  %v1679_v17 = vsel %vm923_vm3, %v1616_v15, 0 }
 0x8d0   : > { %3498 = vmatpush3.bf16.msra.mxu0 %v1679_v17 }
 0x8d1   : > { %3509 = vmatprep.subr.bf16.mxu0 %v4159_v0 }
 0x939   : > { %v1723_v60 = vpop.permute.xlu1 %1722 }
 0x93a   : > { %3506 = vmatmul.mubr.msk.bf16.vlgmr.msra.gmra.mrb[32].mxu1 %vm861_vm2, %v1723_v60 }
 0x93b   : > { %3516 = vmatpush3.bf16.xpose.msra.mxu1 %v1842_v61  ;;  %3517 = vmatprep.mubr.msk.bf16.mxu1 %vm4160_vm0, %v4159_v0 }
 0x93c   : > { %3527 = vmatprep.subr.bf16.mxu1 %v4159_v0 }
 0x93d   : > { %v1835_v63 = vpop.permute.xlu1 %1834 }
 0x941   : > { %v1945_v4 = vpop.permute.xlu1 %1944 }
 0x942   : > { %3518 = vmatmul.mubr.msk.bf16.vlgmr.msra.gmra.mrb[36].mxu1 %vm861_vm2, %v1835_v63 }
 0x943   : > { %3528 = vmatpush3.bf16.xpose.msra.mxu1 %v1952_v1  ;;  %3529 = vmatprep.mubr.msk.bf16.mxu1 %vm4160_vm0, %v4159_v0 }
 0x944   : > { %3539 = vmatprep.subr.bf16.mxu1 %v4159_v0 }
 0x94a   : > { %3530 = vmatmul.mubr.msk.bf16.vlgmr.msra.gmra.mrb[40].mxu1 %vm861_vm2, %v1945_v4 }
 0x94b   : > { %3543 = vmatprep.mubr.msk.bf16.mxu1 %vm4160_vm0, %v4159_v0 }
 0x99a   : > { %v1657_v2 = vpop.f32.mrb[28].mxu1 }
 0x99b   : > { %v1658_v3 = vadd.f32 %v4652_v34, %v1657_v2  ;;  %v3495_v5 = vpop.f32.mrb[29].mxu1 }
 0x99c   : > { %v1660_v7 = vpop.f32.mrb[30].mxu1 }
 0x99d   : > { %v3496_v8 = vpop.f32.mrb[31].mxu1  ;;  %v1663_v9 = vsel %vm861_vm2, %v1658_v3, -inf }
 0x99e   : > { %1664 = vmax.xlane.f32.xlu0 %v1663_v9 }
 0xa0d   : > { %v1767_v18 = vpop.f32.mrb[32].mxu1 }
 0xa0e   : > { %v1768_v19 = vadd.f32 %v4652_v34, %v1767_v18  ;;  %v3507_v20 = vpop.f32.mrb[33].mxu1 }
 0xa0f   : > { %v1770_v21 = vpop.f32.mrb[34].mxu1 }
 0xa10   : > { %v3508_v22 = vpop.f32.mrb[35].mxu1  ;;  %v1773_v23 = vsel %vm861_vm2, %v1768_v19, -inf  ;;  %v3761_v21 = vld [vmem:[#allocation13 + $0x10] sm:$0xff]  }
 0xa11   : > { %1774 = vmax.xlane.f32.xlu1 %v1773_v23  ;;  %3540 = vmatpush3.bf16.msra.mxu1 %v3761_v21 }
 0xa12   : > { %3541 = vmatprep.subr.bf16.mxu1 %v4159_v0 }
 0xa15   : > { %v1878_v24 = vpop.f32.mrb[36].mxu1 }
 0xa16   : > { %v1879_v25 = vadd.f32 %v4652_v34, %v1878_v24  ;;  %v3519_v26 = vpop.f32.mrb[37].mxu1 }
 0xa17   : > { %v1881_v27 = vpop.f32.mrb[38].mxu1  ;;  %v3762_v26 = vld [vmem:[#allocation13 + $0x18] sm:$0xff]  }
 0xa18   : > { %v3520_v6 = vpop.f32.mrb[39].mxu1  ;;  %v1884_v28 = vsel %vm861_vm2, %v1879_v25, -inf  ;;  %3542 = vmatpush3.bf16.msra.mxu1 %v3762_v26  ;;  %v3768_v26 = vld [vmem:[#allocation11 + $0x28] sm:$0xff]  }
 0xa19   : > { %1885 = vmax.xlane.f32.xlu0 %v1884_v28  ;;  %3555 = vmatprep.subr.bf16.mxu1 %v4159_v0 }
 0xa1d   : > { %v1988_v29 = vpop.f32.mrb[40].mxu1 }
 0xa1e   : > { %v1989_v30 = vadd.f32 %v4652_v34, %v1988_v29  ;;  %v3531_v31 = vpop.f32.mrb[41].mxu1 }
 0xa1f   : > { %v1991_v32 = vpop.f32.mrb[42].mxu1 }
 0xa20   : > { %v3532_v33 = vpop.f32.mrb[43].mxu1  ;;  %v1994_v35 = vsel %vm861_vm2, %v1989_v30, -inf }
 0xa21   : > { %1995 = vmax.xlane.f32.xlu0 %v1994_v35 }
 0xa2b   : > { %v1665_v36 = vpop.xlane.xlu0 %1664 }
 0xa2c   : > { %v1666_v37 = vsub.f32 %v1658_v3, %v1665_v36 }
 0xa2e   : > { %v1667_v39 = vmul.f32 1.442695, %v1666_v37 }
 0xa30   : > { %3795 = vpow2.f32 %v1667_v39 }
 0xa3a   : > { %v3796_v40 = vpop.eup %3795 }
 0xa3b   : > { %v1669_v41 = vsel %vm861_vm2, %v3796_v40, 0.0 }
 0xa3c   : > { %1670 = vadd.xlane.f32.xlu1 %v1669_v41 }
 0xa4d   : > { %1786 = vrot.lane.b32.xlu1 %v1616_v15, %s4162_s11 }
 0xa9e   : > { %v1775_v42 = vpop.xlane.xlu1 %1774 }
 0xa9f   : > { %v1776_v43 = vsub.f32 %v1768_v19, %v1775_v42 }
 0xaa1   : > { %v1777_v44 = vmul.f32 1.442695, %v1776_v43  ;;  %v3254_v43 = vld [vmem:[%s5081_s10 + $0x1] ss:$0 sm:$0xff] }
 0xaa3   : > { %3797 = vpow2.f32 %v1777_v44 }
 0xaa6   : > { %v1886_v45 = vpop.xlane.xlu0 %1885 }
 0xaa7   : > { %v1887_v46 = vsub.f32 %v1879_v25, %v1886_v45 }
 0xaa9   : > { %v1888_v47 = vmul.f32 1.442695, %v1887_v46 }
 0xaab   : > { %3799 = vpow2.f32 %v1888_v47 }
 0xaad   : > { %v3798_v48 = vpop.eup %3797 }
 0xaae   : > { %v1996_v49 = vpop.xlane.xlu0 %1995  ;;  %v1779_v50 = vsel %vm861_vm2, %v3798_v48, 0.0 }
 0xaaf   : > { %v1997_v51 = vsub.f32 %v1989_v30, %v1996_v49  ;;  %1780 = vadd.xlane.f32.xlu0 %v1779_v50 }
 0xab1   : > { %v1998_v52 = vmul.f32 1.442695, %v1997_v51 }
 0xab3   : > { %3801 = vpow2.f32 %v1998_v52 }
 0xab5   : > { %v3800_v53 = vpop.eup %3799 }
 0xab6   : > { %v1890_v54 = vsel %vm861_vm2, %v3800_v53, 0.0 }
 0xab7   : > { %1891 = vadd.xlane.f32.xlu1 %v1890_v54 }
 0xabd   : > { %v3802_v55 = vpop.eup %3801 }
 0xabe   : > { %v2000_v56 = vsel %vm861_vm2, %v3802_v55, 0.0 }
 0xabf   : > { %2001 = vadd.xlane.f32.xlu0 %v2000_v56  ;;  %v3763_v56 = vld [vmem:[#allocation10 + $0x20] sm:$0xff]  }
 0xac8   : > { %2006 = vrot.lane.b32.xlu1 %v1616_v15, %s4163_s30 }
 0xac9   : > { %v1671_v57 = vpop.xlane.xlu1 %1670 }
 0xaca   : > { %3803 = vrcp.f32 %v1671_v57  ;;  %v3764_v57 = vld [vmem:[#allocation10 + $0x28] sm:$0xff]  }
 0xacd   : > { %v1787_v59 = vpop.permute.xlu1 %1786 }
 0xace   : > { %v1792_v62 = vsel %vm923_vm3, %v1787_v59, 0  ;;  %v3766_v59 = vld [vmem:[#allocation8 + $0x28] sm:$0xff]  }
 0xad4   : > { %v3804_v58 = vpop.eup %3803 }
 0xad5   : > { %v1673_v60 = vmul.f32 %v3804_v58, %v3796_v40  ;;  %1896 = vrot.lane.b32.xlu0 %v1616_v15, %s4161_s4  ;;  %v3831_v58 = vld [vmem:[%s4568_s5] sm:$0xf]  ;;  %s4069_s5 = scalar_lea.vmem %s4068_s25, 512 }
 0xad7   : > { %v1674_v61 = vpack.c.bf16 %v1673_v60, %v1673_v60 }
 0xad9   : > { %3500 = vmatmul.mubr.msk.bf16.vlgmr.msra.gmra.mrb[32].mxu0 %vm861_vm2, %v1674_v61 }
 0xada   : > { %3510 = vmatpush3.bf16.msra.mxu0 %v1792_v62  ;;  %3511 = vmatprep.mubr.msk.bf16.mxu0 %vm4160_vm0, %v4159_v0 }
 0xadb   : > { %3521 = vmatprep.subr.bf16.mxu0 %v4159_v0 }
 0xb3c   : > { %v1781_v63 = vpop.xlane.xlu0 %1780 }
 0xb3d   : > { %3805 = vrcp.f32 %v1781_v63 }
 0xb44   : > { %v1892_v1 = vpop.xlane.xlu1 %1891 }
 0xb45   : > { %3807 = vrcp.f32 %v1892_v1  ;;  %v3259_v1 = vld [vmem:[%s5082_s8 + $0x1] ss:$0 sm:$0xff] }
 0xb47   : > { %v3806_v4 = vpop.eup %3805 }
 0xb48   : > { %v1783_v2 = vmul.f32 %v3806_v4, %v3798_v48  ;;  %v2007_v11 = vpop.permute.xlu1 %2006 }
 0xb49   : > { %v2012_v13 = vsel %vm923_vm3, %v2007_v11, 0 }
 0xb4a   : > { %v1784_v3 = vpack.c.bf16 %v1783_v2, %v1783_v2  ;;  %v3260_v2 = vld [vmem:[#allocation14 + $0x1] ss:$0 sm:$0xff] }
 0xb4c   : > { %v2002_v5 = vpop.xlane.xlu0 %2001  ;;  %3512 = vmatmul.mubr.msk.bf16.vlgmr.msra.gmra.mrb[36].mxu0 %vm861_vm2, %v1784_v3 }
 0xb4d   : > { %3809 = vrcp.f32 %v2002_v5  ;;  %3523 = vmatprep.mubr.msk.bf16.mxu0 %vm4160_vm0, %v4159_v0 }
 0xb4f   : > { %v3808_v7 = vpop.eup %3807 }
 0xb50   : > { %v1894_v8 = vmul.f32 %v3808_v7, %v3800_v53  ;;  %v1897_v9 = vpop.permute.xlu0 %1896 }
 0xb51   : > { %v1902_v10 = vsel %vm923_vm3, %v1897_v9, 0 }
 0xb52   : > { %3522 = vmatpush3.bf16.msra.mxu0 %v1902_v10  ;;  %v1895_v12 = vpack.c.bf16 %v1894_v8, %v1894_v8  ;;  %v3267_v8 = vld [vmem:[%s5000_s7 + $0x2] ss:$0 sm:$0xff] }
 0xb53   : > { %3533 = vmatprep.subr.bf16.mxu0 %v4159_v0 }
 0xb55   : > { %3524 = vmatmul.mubr.msk.bf16.vlgmr.msra.gmra.mrb[40].mxu0 %vm861_vm2, %v1895_v12 }
 0xb56   : > { %3534 = vmatpush3.bf16.msra.mxu0 %v2012_v13  ;;  %3535 = vmatprep.mubr.msk.bf16.mxu0 %vm4160_vm0, %v4159_v0 }
 0xb57   : > { %v3810_v14 = vpop.eup %3809  ;;  %3547 = vmatprep.subr.bf16.mxu0 %v4159_v0 }
 0xb58   : > { %v2004_v15 = vmul.f32 %v3810_v14, %v3802_v55 }
 0xb5a   : > { %v2005_v16 = vpack.c.bf16 %v2004_v15, %v2004_v15 }
 0xb5d   : > { %3536 = vmatmul.mubr.msk.bf16.vlgmr.msra.gmra.mrb[44].mxu0 %vm861_vm2, %v2005_v16  ;;  %v3262_v16 = vld [vmem:[%s4999_s6 + $0x2] ss:$0 sm:$0xff] }
 0xb5e   : > { %3551 = vmatprep.mubr.msk.bf16.mxu0 %vm4160_vm0, %v4159_v0 }
 0xbac   : > { %v1715_v17 = vpop.f32.mrb[32].mxu0 }
 0xbad   : > { %v3501_v18 = vpop.f32.mrb[33].mxu0 }
 0xbae   : > { %v1718_v19 = vpop.f32.mrb[34].mxu0 }
 0xbaf   : > { %v3502_v20 = vpop.f32.mrb[35].mxu0 }
 0xc1f   : > { %v1828_v22 = vpop.f32.mrb[36].mxu0 }
 0xc20   : > { %2055 = vrot.lane.b32.xlu1 %v1828_v22, %s4164_s28  ;;  %v3513_v23 = vpop.f32.mrb[37].mxu0 }
 0xc21   : > { %v1831_v24 = vpop.f32.mrb[38].mxu0 }
 0xc22   : > { %v3514_v25 = vpop.f32.mrb[39].mxu0 }
 0xc23   : > { %v3767_v25 = vld [vmem:[#allocation11 + $0x20] sm:$0xff]  }
 0xc28   : > { %v1938_v27 = vpop.f32.mrb[40].mxu0 }
 0xc29   : > { %2059 = vrot.lane.b32.xlu0 %v1938_v27, %s4165_s18  ;;  %v3525_v6 = vpop.f32.mrb[41].mxu0 }
 0xc2a   : > { %v1941_v28 = vpop.f32.mrb[42].mxu0 }
 0xc2b   : > { %v3526_v29 = vpop.f32.mrb[43].mxu0 }
 0xc30   : > { %v2048_v30 = vpop.f32.mrb[44].mxu0 }
 0xc31   : > { %2063 = vrot.lane.b32.xlu1 %v2048_v30, %s4166_s15  ;;  %v3537_v31 = vpop.f32.mrb[45].mxu0 }
 0xc32   : > { %v2051_v32 = vpop.f32.mrb[46].mxu0 }
 0xc33   : > { %v3538_v33 = vpop.f32.mrb[47].mxu0 }
 0xc92   : > { %v2056_v35 = vpop.permute.xlu1 %2055 }
 0xc93   : > { %v2066_v37 = vsel %vm861_vm2, %v1715_v17, %v2056_v35 }
 0xc9b   : > { %v2060_v36 = vpop.permute.xlu0 %2059 }
 0xc9c   : > { %v2067_v39 = vsel %vm1313_vm4, %v2066_v37, %v2060_v36 }
 0xca3   : > { %v2064_v40 = vpop.permute.xlu1 %2063 }
 0xca4   : > { %v2068_v41 = vsel %vm1315_vm5, %v2067_v39, %v2064_v40 }
 0xca5   : > { %v2069_v42 = vpack.c.bf16 %v2068_v41, %v2068_v41  ;;  %v3272_v41 = vld [vmem:[%s5080_s27 + $0x2] ss:$0 sm:$0xff] }
 0xca7   : > { %3544 = vmatmul.mubr.msk.bf16.vlgmr.msra.gmra.mrb[44].mxu1 %vm679_vm1, %v2069_v42 }
 0xca8   : > { %3559 = vmatprep.mubr.msk.bf16.mxu1 %vm4160_vm0, %v4159_v0  ;;  %3556 = vmatpush3.bf16.msra.mxu1 %v3763_v56 }
 0xca9   : > { %3557 = vmatprep.subr.bf16.mxu1 %v4159_v0 }
 0xcac   : > { %3558 = vmatpush3.bf16.msra.mxu1 %v3764_v57 }
 0xcad   : > { %3571 = vmatprep.subr.bf16.mxu1 %v4159_v0 }
 0xcaf   : > { %3560 = vmatmul.mubr.msk.bf16.vlgmr.msra.gmra.mrb[48].mxu1 %vm679_vm1, %v3831_v58 }
 0xcb0   : > { %3573 = vmatprep.mubr.msk.bf16.mxu1 %vm4160_vm0, %v4159_v0 }
 0xd7a   : > { %v2132_v44 = vpop.f32.mrb[44].mxu1 }
 0xd7b   : > { %v2133_v45 = vadd.f32 %v3254_v43, %v2132_v44  ;;  %v3545_v46 = vpop.f32.mrb[45].mxu1 }
 0xd7c   : > { %v2135_v47 = vpop.f32.mrb[46].mxu1 }
 0xd7d   : > { %v3546_v48 = vpop.f32.mrb[47].mxu1  ;;  %v2138_v49 = vadd.f32 %v2133_v45, %v4720_v38  ;;  %v3765_v38 = vld [vmem:[#allocation8 + $0x20] sm:$0xff]  }
 0xd7e   : > { %3548 = vmatpush3.bf16.msra.mxu0 %v3765_v38 }
 0xd7f   : > { %v2139_v50 = vsel %vm679_vm1, %v2138_v49, 0.0  ;;  %3549 = vmatprep.subr.bf16.mxu0 %v4159_v0 }
 0xd80   : > { %2140 = vadd.xlane.f32.xlu0 %v2139_v50 }
 0xd82   : > { %3550 = vmatpush3.bf16.msra.mxu0 %v3766_v59  ;;  %v2298_v9 = vpop.f32.mrb[48].mxu1 }
 0xd83   : > { %3563 = vmatprep.subr.bf16.mxu0 %v4159_v0  ;;  %v2299_v10 = vadd.f32 %v3267_v8, %v2298_v9  ;;  %v3561_v11 = vpop.f32.mrb[49].mxu1 }
 0xd84   : > { %v2301_v12 = vpop.f32.mrb[50].mxu1 }
 0xd85   : > { %v2370_v13 = vpack.c.bf16 %v2299_v10, %v2299_v10  ;;  %v3562_v14 = vpop.f32.mrb[51].mxu1 }
 0xd87   : > { %v2376_v15 = vsel %vm861_vm2, %v2370_v13, 0 }
 0xd88   : > { %3572 = vmatpush3.bf16.xpose.msra.mxu1 %v2376_v15 }
 0xd89   : > { %3583 = vmatprep.subr.bf16.mxu1 %v4159_v0 }
 0xd96   : > { %2480 = vrot.lane.b32.xlu0 %v2370_v13, %s4162_s11 }
 0xd9a   : > { %2591 = vrot.lane.b32.xlu0 %v2370_v13, %s4161_s4 }
 0xd9e   : > { %2701 = vrot.lane.b32.xlu0 %v2370_v13, %s4163_s30 }
 0xe0d   : > { %v2141_v51 = vpop.xlane.xlu0 %2140 }
 0xe0e   : > { %v2142_v52 = vmul.f32 0.03125, %v2141_v51 }
 0xe10   : > { %v2143_v53 = vsub.f32 %v2138_v49, %v2142_v52 }
 0xe11   : > { %v2481_v21 = vpop.permute.xlu0 %2480 }
 0xe12   : > { %v2144_v54 = vmul.f32 %v2143_v53, %v2143_v53  ;;  %v2486_v24 = vsel %vm861_vm2, %v2481_v21, 0 }
 0xe14   : > { %v2145_v55 = vsel %vm679_vm1, %v2144_v54, 0.0 }
 0xe15   : > { %2146 = vadd.xlane.f32.xlu1 %v2145_v55  ;;  %v2592_v27 = vpop.permute.xlu0 %2591 }
 0xe16   : > { %v2597_v28 = vsel %vm861_vm2, %v2592_v27, 0 }
 0xe19   : > { %v2702_v29 = vpop.permute.xlu0 %2701 }
 0xe1a   : > { %v2707_v31 = vsel %vm861_vm2, %v2702_v29, 0 }
 0xea2   : > { %v2147_v60 = vpop.xlane.xlu1 %2146 }
 0xea3   : > { %v2148_v61 = vmul.f32 0.03125, %v2147_v60 }
 0xea5   : > { %v2149_v62 = vadd.f32 1e-05, %v2148_v61  ;;  %v3832_v61 = vld [vmem:[%s575_s1] ss:$0 sm:$0xff]  ;;  %s5085_s1 = sld [smem:[#allocation27_spill]] }
 0xea7   : > { %3811 = vrsqrt.f32 %v2149_v62 }
 0xeab   : > { %p5087_p8 = scmp.ne.s32.totalorder %s5085_s1, 0 }
 0xeb1   : > { %v3812_v63 = vpop.eup %3811 }
 0xeb2   : > { %v2151_v4 = vmul.f32 %v3812_v63, %v2143_v53 }
 0xeb4   : > { %v2160_v3 = vmul.f32 %v3259_v1, %v2151_v4 }
 0xeb6   : > { %v4831_v5 = vadd.f32 %v3260_v2, %v2160_v3 }
 0xeb8   : > { %v2170_v7 = vpack.c.bf16 %v4831_v5, %v4831_v5 }
 0xeba   : > { %3552 = vmatmul.mubr.msk.bf16.vlgmr.msra.gmra.mrb[48].mxu0 %vm679_vm1, %v2170_v7 }
 0xebb   : > { %3567 = vmatprep.mubr.msk.bf16.mxu0 %vm4160_vm0, %v4159_v0  ;;  %3564 = vmatpush3.bf16.msra.mxu0 %v3767_v25 }
 0xebc   : > { %3565 = vmatprep.subr.bf16.mxu0 %v4159_v0 }
 0xebf   : > { %3566 = vmatpush3.bf16.msra.mxu0 %v3768_v26 }
 0xec0   : > { %3577 = vmatprep.subr.bf16.mxu0 %v4159_v0 }
 0xec2   : > { %3568 = vmatmul.mubr.msk.bf16.vlgmr.msra.gmra.mrb[52].mxu0 %vm679_vm1, %v3831_v58 }
 0xec3   : > { %3579 = vmatprep.mubr.msk.bf16.mxu0 %vm4160_vm0, %v4159_v0 }
 0xf8d   : > { %v2233_v17 = vpop.f32.mrb[48].mxu0 }
 0xf8e   : > { %v2234_v18 = vadd.f32 %v3262_v16, %v2233_v17  ;;  %v3553_v19 = vpop.f32.mrb[49].mxu0 }
 0xf8f   : > { %v2236_v20 = vpop.f32.mrb[50].mxu0 }
 0xf90   : > { %v2369_v22 = vpack.c.bf16 %v2234_v18, %v2234_v18  ;;  %v3554_v23 = vpop.f32.mrb[51].mxu0 }
 0xf92   : > { %2477 = vrot.lane.b32.xlu1 %v2369_v22, %s4162_s11  ;;  %3574 = vmatmul.mubr.msk.bf16.vlgmr.msra.gmra.mrb[52].mxu1 %vm861_vm2, %v2369_v22 }
 0xf93   : > { %3584 = vmatpush3.bf16.xpose.msra.mxu1 %v2486_v24  ;;  %3585 = vmatprep.mubr.msk.bf16.mxu1 %vm4160_vm0, %v4159_v0 }
 0xf94   : > { %3595 = vmatprep.subr.bf16.mxu1 %v4159_v0 }
 0xf95   : > { %v2363_v42 = vpop.f32.mrb[52].mxu0 }
 0xf96   : > { %2589 = vrot.lane.b32.xlu1 %v2369_v22, %s4161_s4  ;;  %v2364_v43 = vadd.f32 %v3272_v41, %v2363_v42  ;;  %v3569_v44 = vpop.f32.mrb[53].mxu0 }
 0xf97   : > { %v2366_v45 = vpop.f32.mrb[54].mxu0 }
 0xf98   : > { %v2371_v46 = vpack.c.bf16 %v2364_v43, %v2364_v43  ;;  %v3570_v47 = vpop.f32.mrb[55].mxu0 }
 0xf9a   : > { %2699 = vrot.lane.b32.xlu1 %v2369_v22, %s4163_s30  ;;  %v2434_v48 = vsel %vm923_vm3, %v2371_v46, 0 }
 0xf9b   : > { %3578 = vmatpush3.bf16.msra.mxu0 %v2434_v48 }
 0xf9c   : > { %3589 = vmatprep.subr.bf16.mxu0 %v4159_v0 }
0x1004   : > { %v2478_v6 = vpop.permute.xlu1 %2477 }
0x1005   : > { %3586 = vmatmul.mubr.msk.bf16.vlgmr.msra.gmra.mrb[56].mxu1 %vm861_vm2, %v2478_v6 }
0x1006   : > { %3596 = vmatpush3.bf16.xpose.msra.mxu1 %v2597_v28  ;;  %3597 = vmatprep.mubr.msk.bf16.mxu1 %vm4160_vm0, %v4159_v0 }
0x1007   : > { %3607 = vmatprep.subr.bf16.mxu1 %v4159_v0 }
0x1008   : > { %v2590_v30 = vpop.permute.xlu1 %2589 }
0x100c   : > { %v2700_v32 = vpop.permute.xlu1 %2699 }
0x100d   : > { %3598 = vmatmul.mubr.msk.bf16.vlgmr.msra.gmra.mrb[60].mxu1 %vm861_vm2, %v2590_v30 }
0x100e   : > { %3608 = vmatpush3.bf16.xpose.msra.mxu1 %v2707_v31  ;;  %3609 = vmatprep.mubr.msk.bf16.mxu1 %vm4160_vm0, %v4159_v0 }
0x100f   : > { %3619 = vmatprep.subr.bf16.mxu1 %v4159_v0 }
0x1015   : > { %3610 = vmatmul.mubr.msk.bf16.vlgmr.msra.gmra.mrb[64].mxu1 %vm861_vm2, %v2700_v32 }
0x1016   : > { %3623 = vmatprep.mubr.msk.bf16.mxu1 %vm4160_vm0, %v4159_v0 }
0x1065   : > { %v2412_v33 = vpop.f32.mrb[52].mxu1 }
0x1066   : > { %v2413_v35 = vadd.f32 %v4652_v34, %v2412_v33  ;;  %v3575_v36 = vpop.f32.mrb[53].mxu1 }
0x1067   : > { %v2415_v37 = vpop.f32.mrb[54].mxu1 }
0x1068   : > { %v3576_v39 = vpop.f32.mrb[55].mxu1  ;;  %v2418_v40 = vsel %vm861_vm2, %v2413_v35, -inf }
0x1069   : > { %2419 = vmax.xlane.f32.xlu0 %v2418_v40 }
0x10d8   : > { %v2522_v49 = vpop.f32.mrb[56].mxu1 }
0x10d9   : > { %v2523_v50 = vadd.f32 %v4652_v34, %v2522_v49  ;;  %v3587_v51 = vpop.f32.mrb[57].mxu1 }
0x10da   : > { %v2525_v52 = vpop.f32.mrb[58].mxu1 }
0x10db   : > { %v3588_v53 = vpop.f32.mrb[59].mxu1  ;;  %v2528_v54 = vsel %vm861_vm2, %v2523_v50, -inf  ;;  %v3769_v52 = vld [vmem:[#allocation13 + $0x20] sm:$0xff]  }
0x10dc   : > { %2529 = vmax.xlane.f32.xlu1 %v2528_v54  ;;  %3620 = vmatpush3.bf16.msra.mxu1 %v3769_v52 }
0x10dd   : > { %3621 = vmatprep.subr.bf16.mxu1 %v4159_v0 }
0x10e0   : > { %v2633_v55 = vpop.f32.mrb[60].mxu1 }
0x10e1   : > { %v2634_v56 = vadd.f32 %v4652_v34, %v2633_v55  ;;  %v3599_v57 = vpop.f32.mrb[61].mxu1 }
0x10e2   : > { %v2636_v58 = vpop.f32.mrb[62].mxu1  ;;  %v3770_v57 = vld [vmem:[#allocation13 + $0x28] sm:$0xff]  }
0x10e3   : > { %v3600_v38 = vpop.f32.mrb[63].mxu1  ;;  %v2639_v59 = vsel %vm861_vm2, %v2634_v56, -inf  ;;  %3622 = vmatpush3.bf16.msra.mxu1 %v3770_v57 }
0x10e4   : > { %2640 = vmax.xlane.f32.xlu0 %v2639_v59 }
0x10e8   : > { %v2743_v60 = vpop.f32.mrb[64].mxu1 }
0x10e9   : > { %v2744_v62 = vadd.f32 %v3832_v61, %v2743_v60  ;;  %v3611_v63 = vpop.f32.mrb[65].mxu1 }
0x10ea   : > { %v2746_v1 = vpop.f32.mrb[66].mxu1 }
0x10eb   : > { %v3612_v4 = vpop.f32.mrb[67].mxu1  ;;  %v2749_v2 = vsel %vm861_vm2, %v2744_v62, -inf }
0x10ec   : > { %2750 = vmax.xlane.f32.xlu0 %v2749_v2 }
0x10f6   : > { %v2420_v3 = vpop.xlane.xlu0 %2419 }
0x10f7   : > { %v2421_v7 = vsub.f32 %v2413_v35, %v2420_v3 }
0x10f9   : > { %v2422_v8 = vmul.f32 1.442695, %v2421_v7 }
0x10fb   : > { %3813 = vpow2.f32 %v2422_v8 }
0x1105   : > { %v3814_v34 = vpop.eup %3813 }
0x1106   : > { %v2424_v9 = vsel %vm861_vm2, %v3814_v34, 0.0 }
0x1107   : > { %2425 = vadd.xlane.f32.xlu1 %v2424_v9  ;;  %v3285_v9 = vld [vmem:[%s5081_s10 + $0x2] ss:$0 sm:$0xff] }
0x1118   : > { %2541 = vrot.lane.b32.xlu1 %v2371_v46, %s4162_s11 }
0x1169   : > { %v2530_v10 = vpop.xlane.xlu1 %2529 }
0x116a   : > { %v2531_v11 = vsub.f32 %v2523_v50, %v2530_v10 }
0x116c   : > { %v2532_v12 = vmul.f32 1.442695, %v2531_v11 }
0x116e   : > { %3815 = vpow2.f32 %v2532_v12 }
0x1171   : > { %v2641_v13 = vpop.xlane.xlu0 %2640 }
0x1172   : > { %v2642_v14 = vsub.f32 %v2634_v56, %v2641_v13 }
0x1174   : > { %v2643_v15 = vmul.f32 1.442695, %v2642_v14 }
0x1176   : > { %3817 = vpow2.f32 %v2643_v15 }
0x1178   : > { %v3816_v16 = vpop.eup %3815 }
0x1179   : > { %v2751_v17 = vpop.xlane.xlu0 %2750  ;;  %v2534_v18 = vsel %vm861_vm2, %v3816_v16, 0.0 }
0x117a   : > { %v2752_v19 = vsub.f32 %v2744_v62, %v2751_v17  ;;  %2535 = vadd.xlane.f32.xlu0 %v2534_v18 }
0x117c   : > { %v2753_v20 = vmul.f32 1.442695, %v2752_v19 }
0x117e   : > { %3819 = vpow2.f32 %v2753_v20 }
0x1180   : > { %v3818_v21 = vpop.eup %3817 }
0x1181   : > { %v2645_v22 = vsel %vm861_vm2, %v3818_v21, 0.0 }
0x1182   : > { %2646 = vadd.xlane.f32.xlu1 %v2645_v22 }
0x1188   : > { %v3820_v23 = vpop.eup %3819 }
0x1189   : > { %v2755_v24 = vsel %vm861_vm2, %v3820_v23, 0.0 }
0x118a   : > { %2756 = vadd.xlane.f32.xlu0 %v2755_v24 }
0x1193   : > { %2761 = vrot.lane.b32.xlu1 %v2371_v46, %s4163_s30 }
0x1194   : > { %v2426_v25 = vpop.xlane.xlu1 %2425 }
0x1195   : > { %3821 = vrcp.f32 %v2426_v25  ;;  %v4167_v25 = vmov 0  }
0x1198   : > { %v2542_v27 = vpop.permute.xlu1 %2541 }
0x1199   : > { %v2547_v29 = vsel %vm923_vm3, %v2542_v27, 0 }
0x119f   : > { %v3822_v26 = vpop.eup %3821 }
0x11a0   : > { %v2428_v6 = vmul.f32 %v3822_v26, %v3814_v34  ;;  %2651 = vrot.lane.b32.xlu0 %v2371_v46, %s4161_s4  ;;  %s650_s4 = scalar_lea.vmem [#allocation16], %s3202_s26 }
0x11a1   : > { %s3023_s11 = sshll.u32 %s650_s4, 4  ;;  %s4951_s11 = int_to_ptr.vmem [resolvable:$true] %s3023_s11 }
0x11a2   : > { %v2429_v28 = vpack.c.bf16 %v2428_v6, %v2428_v6  ;;  %s4063_s17 = scalar_lea.vmem %s4951_s11, 256  ;;  %p4070_p4 = scmp.lt.s32.totalorder %s4951_s11, %s4068_s25 }
0x11a3   : > { %p4064_p1 = scmp.ne.s32.totalorder %s4951_s11, %s4063_s17  ;;  %p4071_p12 = scmp.lt.s32.totalorder %s4069_s5, %s4063_s17 }
0x11a4   : > { %3580 = vmatmul.mubr.msk.bf16.vlgmr.msra.gmra.mrb[56].mxu0 %vm861_vm2, %v2429_v28 }
0x11a5   : > { %3590 = vmatpush3.bf16.msra.mxu0 %v2547_v29  ;;  %3591 = vmatprep.mubr.msk.bf16.mxu0 %vm4160_vm0, %v4159_v0  ;;  %v3290_v29 = vld [vmem:[%s5082_s8 + $0x2] ss:$0 sm:$0xff]  ;;  %p4065_p5 = pnand %p4064_p1, %p5087_p8  ;;  %p4072_p2 = por %p4071_p12, %p4070_p4 }
0x11a6   : > { %3601 = vmatprep.subr.bf16.mxu0 %v4159_v0 }
0x11a7   : > { %p4066_p10 = pneg %p4065_p5 }
0x11a9   : > { %p4073_p3 = pnand %p4072_p2, %p4066_p10 }
0x1207   : > { %v2536_v30 = vpop.xlane.xlu0 %2535 }
0x1208   : > { %3823 = vrcp.f32 %v2536_v30 }
0x120f   : > { %v2647_v31 = vpop.xlane.xlu1 %2646 }
0x1210   : > { %3825 = vrcp.f32 %v2647_v31  ;;  %v3291_v31 = vld [vmem:[#allocation14 + $0x2] ss:$0 sm:$0xff] }
0x1212   : > { %v3824_v32 = vpop.eup %3823 }
0x1213   : > { %v2538_v33 = vmul.f32 %v3824_v32, %v3816_v16  ;;  %v2762_v42 = vpop.permute.xlu1 %2761 }
0x1214   : > { %v2767_v44 = vsel %vm923_vm3, %v2762_v42, 0 }
0x1215   : > { %v2539_v35 = vpack.c.bf16 %v2538_v33, %v2538_v33 }
0x1217   : > { %v2757_v36 = vpop.xlane.xlu0 %2756  ;;  %3592 = vmatmul.mubr.msk.bf16.vlgmr.msra.gmra.mrb[60].mxu0 %vm861_vm2, %v2539_v35 }
0x1218   : > { %3827 = vrcp.f32 %v2757_v36  ;;  %3603 = vmatprep.mubr.msk.bf16.mxu0 %vm4160_vm0, %v4159_v0  ;;  %v2932_v36 = vlaneseq }
0x121a   : > { %v3826_v37 = vpop.eup %3825 }
0x121b   : > { %v2649_v39 = vmul.f32 %v3826_v37, %v3818_v21  ;;  %v2652_v40 = vpop.permute.xlu0 %2651  ;;  %v2933_v37 = vshrl.u32 %v2932_v36, 7 }
0x121c   : > { %v2657_v41 = vsel %vm923_vm3, %v2652_v40, 0  ;;  %v2930_v40 = vld [vmem:[%s5084_s20] sm:$0x3] }
0x121d   : > { %3602 = vmatpush3.bf16.msra.mxu0 %v2657_v41  ;;  %v2650_v43 = vpack.c.bf16 %v2649_v39, %v2649_v39  ;;  %v2934_v39 = vsub.s32 0, %v2933_v37  ;;  %v2938_v41 = vsub.s32 1, %v2933_v37 }
0x121e   : > { %3613 = vmatprep.subr.bf16.mxu0 %v4159_v0 }
0x121f   : > { %v2935_v42 = vrot.slane %v2930_v40, %v2934_v39 }
0x1220   : > { %3604 = vmatmul.mubr.msk.bf16.vlgmr.msra.gmra.mrb[64].mxu0 %vm861_vm2, %v2650_v43  ;;  %v2939_v43 = vrot.slane %v2930_v40, %v2938_v41 }
0x1221   : > { %3614 = vmatpush3.bf16.msra.mxu0 %v2767_v44  ;;  %3615 = vmatprep.mubr.msk.bf16.mxu0 %vm4160_vm0, %v4159_v0 }
0x1222   : > { %v3828_v45 = vpop.eup %3827 }
0x1223   : > { %v2759_v46 = vmul.f32 %v3828_v45, %v3820_v23 }
0x1225   : > { %v2760_v47 = vpack.c.bf16 %v2759_v46, %v2759_v46 }
0x1228   : > { %3616 = vmatmul.mubr.msk.bf16.vlgmr.msra.gmra.mrb[68].mxu0 %vm861_vm2, %v2760_v47 }
0x1229   : > { %2997 = vmatprep.mubr.bf16.mxu0 %v4167_v25 }
0x1277   : > { %v2470_v48 = vpop.f32.mrb[56].mxu0 }
0x1278   : > { %v3581_v49 = vpop.f32.mrb[57].mxu0 }
0x1279   : > { %v2473_v50 = vpop.f32.mrb[58].mxu0 }
0x127a   : > { %v3582_v51 = vpop.f32.mrb[59].mxu0 }
0x12ea   : > { %v2583_v53 = vpop.f32.mrb[60].mxu0 }
0x12eb   : > { %2810 = vrot.lane.b32.xlu1 %v2583_v53, %s4164_s28  ;;  %v3593_v54 = vpop.f32.mrb[61].mxu0  ;;  %s5083_s28 = sld [smem:[#allocation36_spill]] }
0x12ec   : > { %v2586_v55 = vpop.f32.mrb[62].mxu0 }
0x12ed   : > { %v3594_v56 = vpop.f32.mrb[63].mxu0 }
0x12f1   : > { %v3773_v22 = vld [vmem:[%s5083_s28 + $0x4] ss:$8 sps:$4 sm:$0xff]   ;;  %v3771_v23 = vld [vmem:[%s5083_s28] ss:$8 sps:$4 sm:$0xff]   ;;  %v3776_v24 = vld [vmem:[%s5083_s28 + $0x14] ss:$8 sps:$4 sm:$0xff]  }
0x12f2   : > { %2965 = vmatprep.subr.bf16.mxu0 %v3773_v22 }
0x12f3   : > { %v2693_v58 = vpop.f32.mrb[64].mxu0  ;;  %2966 = vmatpush1.bf16.msra.mxu0 %v3771_v23 }
0x12f4   : > { %2814 = vrot.lane.b32.xlu0 %v2693_v58, %s4165_s18  ;;  %v3605_v38 = vpop.f32.mrb[65].mxu0  ;;  %2967 = vmatprep.subr.bf16.mxu0 %v3776_v24 }
0x12f5   : > { %v2696_v59 = vpop.f32.mrb[66].mxu0 }
0x12f6   : > { %v3606_v60 = vpop.f32.mrb[67].mxu0 }
0x12fb   : > { %v2803_v61 = vpop.f32.mrb[68].mxu0 }
0x12fc   : > { %2818 = vrot.lane.b32.xlu1 %v2803_v61, %s4166_s15  ;;  %v3617_v62 = vpop.f32.mrb[69].mxu0  ;;  %s5086_s15 = sld [smem:[#allocation38_spill]] }
0x12fd   : > { %v2806_v63 = vpop.f32.mrb[70].mxu0 }
0x12fe   : > { %v3618_v1 = vpop.f32.mrb[71].mxu0 }
0x1302   : > { %s4949_s29 = scalar_lea.hbm %s5086_s15, %s3302_s16 }
0x135d   : > { %v2811_v0 = vpop.permute.xlu1 %2810 }
0x135e   : > { %v2821_v2 = vsel %vm861_vm2, %v2470_v48, %v2811_v0 }
0x1366   : > { %v2815_v4 = vpop.permute.xlu0 %2814 }
0x1367   : > { %v2822_v3 = vsel %vm1313_vm4, %v2821_v2, %v2815_v4 }
0x136e   : > { %v2819_v7 = vpop.permute.xlu1 %2818 }
0x136f   : > { %v2823_v8 = vsel %vm1315_vm5, %v2822_v3, %v2819_v7 }
0x1370   : > { %v2824_v34 = vpack.c.bf16 %v2823_v8, %v2823_v8 }
0x1372   : > { %3624 = vmatmul.mubr.msk.bf16.vlgmr.msra.gmra.mrb[68].mxu1 %vm679_vm1, %v2824_v34 }
0x1445   : > { %v2887_v10 = vpop.f32.mrb[68].mxu1 }
0x1446   : > { %v2888_v11 = vadd.f32 %v3285_v9, %v2887_v10  ;;  %v3625_v12 = vpop.f32.mrb[69].mxu1 }
0x1447   : > { %v2890_v13 = vpop.f32.mrb[70].mxu1 }
0x1448   : > { %v3626_v14 = vpop.f32.mrb[71].mxu1  ;;  %v2893_v15 = vadd.f32 %v2888_v11, %v4831_v5  ;;  %v3774_v5 = vld [vmem:[%s5083_s28 + $0x10] ss:$8 sps:$4 sm:$0xff]  }
0x1449   : > { %2968 = vmatpush1.bf16.msra.mxu0 %v3774_v5 }
0x144a   : > { %v2894_v16 = vsel %vm679_vm1, %v2893_v15, 0.0 }
0x144b   : > { %2895 = vadd.xlane.f32.xlu0 %v2894_v16 }
0x14d8   : > { %v2896_v17 = vpop.xlane.xlu0 %2895 }
0x14d9   : > { %v2897_v18 = vmul.f32 0.03125, %v2896_v17 }
0x14db   : > { %v2898_v19 = vsub.f32 %v2893_v15, %v2897_v18 }
0x14dd   : > { %v2899_v20 = vmul.f32 %v2898_v19, %v2898_v19 }
0x14df   : > { %v2900_v21 = vsel %vm679_vm1, %v2899_v20, 0.0 }
0x14e0   : > { %2901 = vadd.xlane.f32.xlu1 %v2900_v21 }
0x156d   : > { %v2902_v26 = vpop.xlane.xlu1 %2901 }
0x156e   : > { %v2903_v27 = vmul.f32 0.03125, %v2902_v26 }
0x1570   : > { %v2904_v6 = vadd.f32 1e-05, %v2903_v27 }
0x1572   : > { %3829 = vrsqrt.f32 %v2904_v6 }
0x157c   : > { %v3830_v28 = vpop.eup %3829 }
0x157d   : > { %v2906_v30 = vmul.f32 %v3830_v28, %v2898_v19 }
0x157f   : > { %v2915_v32 = vmul.f32 %v3290_v29, %v2906_v30 }
0x1581   : > { %v2924_v33 = vadd.f32 %v3291_v31, %v2915_v32 }
0x1583   : > { %v2925_v35 = vpack.c.bf16 %v2924_v33, %v2924_v33 }
0x1585   : > { %3296 = vmatmul.mubr.msk.bf16.vlgmr.msra.gmra.mrb[72].mxu0 %vm679_vm1, %v2925_v35 }
0x1658   : > { %v2999_v44 = vpop.f32.mrb[72].mxu0 }
0x1659   : > { %v3000_v45 = vadd.f32 %v2999_v44, %v2935_v42  ;;  %v3001_v46 = vpop.f32.mrb[73].mxu0 }
0x165a   : > { %v3002_v47 = vadd.f32 %v3001_v46, %v2939_v43  ;;  %v3003_v48 = vpop.f32.mrb[74].mxu0 }
0x165b   : > { %3006 = vst [vmem:[%s650_s4] sm:$0xff] %v3000_v45  ;;  %v3004_v49 = vpop.f32.mrb[75].mxu0 }
0x165c   : > { %3007 = vst [vmem:[%s650_s4 + $0x8] sm:$0xff] %v3002_v47 }
0x165d   : > { %4076 = shalt.err (!%p4073_p3)
}
0x165e   : > { %s4077_s13 = scalar_lea.hbm %s4949_s29, 256  ;;  %s4081_s3 = scalar_lea.hbm %s5086_s15, 512 }
0x165f   : > { %p4078_p11 = scmp.ne.s32.totalorder %s4949_s29, %s4077_s13  ;;  %p4082_p9 = scmp.lt.u32.totalorder %s4949_s29, %s5086_s15 }
0x1660   : > { %p4083_p6 = scmp.lt.u32.totalorder %s4081_s3, %s4077_s13  ;;  %p4085_p1 = scmp.lt.u32.totalorder %s4077_s13, %s4949_s29 }
0x1661   : > { %p4079_p0 = pnand %p4078_p11, %p5087_p8 }
0x1662   : > { %p4084_p13 = por %p4083_p6, %p4082_p9 }
0x1663   : > { %p4080_p7 = pneg %p4079_p0 }
0x1664   : > { %p4086_p5 = por %p4085_p1, %p4084_p13 }
0x1666   : > { %p4087_p10 = pnand %p4086_p5, %p4080_p7 }
0x1668   : > { %4090 = shalt.err (!%p4087_p10)
}
0x1669   : > { %3653 = dma.vmem_to_hbm [thread:$0]  (%p5087_p8), %s4951_s11, 256, %s4949_s29, %s3009_s24  }
0x166a PF: > { %s5088_s16 = sld [smem:[#allocation23_spill]]  ;;  %s5089_s4 = sld [smem:[#allocation28_spill]] }
0x166b   : > { %p5091_p12 = scmp.ge.s32.totalorder %s4145_s21, 2 }
0x1670   : > { %s3035_s30 = sand.u32 1, %s5088_s16   ;;  %p5090_p4 = scmp.ne.s32.totalorder %s5089_s4, 0 }
0x1671   : > { %s3036_s18 = scalar_lea.sflag [#allocation4], %s3035_s30 }
0x1672   : > { %p3682_p2 = pnand %p5091_p12, %p5090_p4 }
0x1674   : > { %4128 = dma.done.wait (!%p3682_p2), %s3036_s18, 256  }
0x1675   : > { %4130 = vsyncadd (!%p3682_p2), %s3036_s18, 4294967040  ;;  %s5092_s21 = sld [smem:[#allocation25_spill]]  ;;  %s5093_s17 = sld [smem:[#allocation24_spill]] }
0x1676   : > { %s5094_s20 = sld [smem:[#allocation26_spill]]  ;;  %s5095_s18 = smov %s4137_s19 }
0x167b   : > { %p34_p3 = scmp.ge.s32.totalorder %s5092_s21, 4   ;;  %s5096_s19 = smov %s5093_s17 }
0x167d   :  { %36 = sbr.rel (!%p34_p3) target bundleno = 21 (0x15), region = 189 }
0x1684   :  { %3041 = vsyncpa [#allocation3], 1 }
0x1685   :  { %3043 = vsyncpa [#allocation3 + $0x1], 1 }
0x1686   :  { %3044 = vsyncpa [#allocation6], 1 }
0x1687   :  { %3046 = vsyncpa [#allocation6 + $0x1], 1 }
0x1688   :  { %3047 = vsyncpa [#allocation9], 1 }
0x1689   :  { %3048 = vsyncpa [#allocation12], 1 }
0x168a   :  { %3049 = vsyncpa [#allocation15], 1 }
0x168b   :  { %3050 = vsyncpa [#allocation4], 1 }
0x168c   :  { %3052 = vsyncpa [#allocation4 + $0x1], 1 }

</bundles_post_ra>
